<compile_context>
chip_gen: v7x
topology: tpu7x:2x2x1
jax: 0.10.0
libtpu: 0.0.40
codegen_flags: <defaults>
</compile_context>

<pallas_src>
import jax
import jax.numpy as jnp
from jax.experimental import pallas as pl
from jax.experimental.pallas import tpu as pltpu


# ----------------------------------------------------------------------------
# Fused kernel factory: per-batch grid step = embedding gather + encoder layer
# ----------------------------------------------------------------------------
def _make_code_layer_kernel(S, H, V):
    scale = 1.0 / (float(H) ** 0.5)
    bf = jnp.bfloat16

    def kernel(ids_ref,        # SMEM (B*S,) int32     (scalar prefetch)
               table_ref,      # VMEM (V, H)  f32      (resident across grid steps)
               wqkv_ref,       # VMEM (H, 3H) bf16
               wo_ref,         # VMEM (H, H)  bf16
               w1_ref,         # VMEM (H, F)  bf16
               w2_ref,         # VMEM (F, H)  bf16
               vecs_ref,       # VMEM (9, H)  f32: bq,bk,bv,bo,b2,g1,be1,g2,be2
               b1_ref,         # VMEM (1, F)  f32
               emb_out_ref,    # VMEM (1, S, H) f32  -> new tgt rows of batch b
               enc_out_ref,    # VMEM (1, S, H) f32  -> new memory rows of batch b
               emb_sc):        # VMEM scratch (S, H) f32
        b = pl.program_id(0)

        # ---- hoisted (1, H) parameter rows (loaded once per step, named) ----
        bq = vecs_ref[0:1, :]
        bk = vecs_ref[1:2, :]
        bv = vecs_ref[2:3, :]
        bo = vecs_ref[3:4, :]
        b2 = vecs_ref[4:5, :]
        g1 = vecs_ref[5:6, :]
        be1 = vecs_ref[6:7, :]
        g2 = vecs_ref[7:8, :]
        be2 = vecs_ref[8:9, :]

        # ---- 1) embedding: in-VMEM dynamic row-slice gather (no DMA descriptors) ----
        base = b * S
        # S is small -> unrolled python loop is fine.
        # TODO(synk): for very large S, switch to lax.fori_loop to bound instruction memory.
        for i in range(S):
            tid = jnp.minimum(jnp.maximum(ids_ref[base + i], 0), V - 1)  # clamp OOB ids
            emb_sc[pl.ds(i, 1), :] = table_ref[pl.ds(tid, 1), :]
        emb = emb_sc[...]                                   # (S, H) f32

        # ---- 2) new tgt rows (old tgt is concatenated outside the kernel) ----
        emb_out_ref[0] = emb

        # ---- 3) post-norm transformer encoder layer (single head, eval) ----
        qkv = jnp.dot(emb.astype(bf), wqkv_ref[...],
                      preferred_element_type=jnp.float32)   # (S, 3H) f32
        q = (qkv[:, 0:H] + bq) * scale
        k = qkv[:, H:2 * H] + bk
        v = qkv[:, 2 * H:3 * H] + bv

        # q . k^T via dot_general contracting the last dims (no explicit transpose)
        s = jax.lax.dot_general(q.astype(bf), k.astype(bf),
                                (((1,), (1,)), ((), ())),
                                preferred_element_type=jnp.float32)     # (S, S)
        s = s - jnp.max(s, axis=-1, keepdims=True)
        p = jnp.exp(s)
        p = p * pl.reciprocal(jnp.sum(p, axis=-1, keepdims=True), approx=True)
        ctx = jnp.dot(p.astype(bf), v.astype(bf),
                      preferred_element_type=jnp.float32)               # (S, H)
        attn = jnp.dot(ctx.astype(bf), wo_ref[...],
                       preferred_element_type=jnp.float32) + bo

        # residual + LayerNorm 1 (eps=1e-5), f32 math
        h = emb + attn
        mu = jnp.mean(h, axis=-1, keepdims=True)
        var = jnp.mean((h - mu) ** 2, axis=-1, keepdims=True)
        h = (h - mu) * jax.lax.rsqrt(var + 1e-5) * g1 + be1

        # feed-forward (ReLU)
        f = jnp.dot(h.astype(bf), w1_ref[...],
                    preferred_element_type=jnp.float32) + b1_ref[...]
        f = jnp.maximum(f, 0.0)
        f = jnp.dot(f.astype(bf), w2_ref[...],
                    preferred_element_type=jnp.float32) + b2

        # residual + LayerNorm 2 (eps=1e-5)
        y = h + f
        mu2 = jnp.mean(y, axis=-1, keepdims=True)
        var2 = jnp.mean((y - mu2) ** 2, axis=-1, keepdims=True)
        y = (y - mu2) * jax.lax.rsqrt(var2 + 1e-5) * g2 + be2

        # ---- 4) new memory rows (old memory concatenated outside the kernel) ----
        enc_out_ref[0] = y

    return kernel


def _resident_spec(shape):
    """Full-array block whose block index is constant across the batch grid."""
    zeros = (0,) * len(shape)
    return pl.BlockSpec(shape, lambda b, ids, _z=zeros: _z)


def _fused_code_layer_call(source, table, packed):
    B, S = source.shape
    V, H = table.shape
    F = packed["w1"].shape[1]

    kernel = _make_code_layer_kernel(S, H, V)

    weight_inputs = [table.astype(jnp.float32), packed["wqkv"], packed["wo"],
                     packed["w1"], packed["w2"], packed["vecs"], packed["b1"]]
    in_specs = [_resident_spec(tuple(x.shape)) for x in weight_inputs]

    out_shape = (jax.ShapeDtypeStruct((B, S, H), jnp.float32),
                 jax.ShapeDtypeStruct((B, S, H), jnp.float32))
    out_specs = [pl.BlockSpec((1, S, H), lambda b, ids: (b, 0, 0)),
                 pl.BlockSpec((1, S, H), lambda b, ids: (b, 0, 0))]

    # Explicit VMEM budget (review: keep v7x's 64 MiB in mind). Inputs/outputs are
    # double-buffered by the pipeline; add a generous safety factor.
    in_bytes = sum(int(x.size) * x.dtype.itemsize for x in weight_inputs)
    out_bytes = 2 * S * H * 4
    scratch_bytes = S * H * 4
    vmem_limit = min(128 << 20, max(8 << 20, 4 * (in_bytes + out_bytes) + scratch_bytes))

    grid_spec = pltpu.PrefetchScalarGridSpec(
        num_scalar_prefetch=1,
        grid=(B,),
        in_specs=in_specs,
        out_specs=out_specs,
        scratch_shapes=[pltpu.VMEM((S, H), jnp.float32)],
    )

    fn = pl.pallas_call(
        kernel,
        out_shape=out_shape,
        grid_spec=grid_spec,
        compiler_params=pltpu.CompilerParams(
            dimension_semantics=("parallel",),   # batches independent -> use both v7x TCs
            vmem_limit_bytes=int(vmem_limit)),
    )
    ids_flat = source.reshape(-1).astype(jnp.int32)
    return fn(ids_flat, *weight_inputs)


# ----------------------------------------------------------------------------
# Parameter packing (fused QKV + stacked (9,H) vectors, bf16 MXU weights)
# ----------------------------------------------------------------------------
def _pack_encoder_params(p):
    return {
        "wqkv": jnp.concatenate([p["wq"], p["wk"], p["wv"]], axis=1).astype(jnp.bfloat16),
        "wo": p["wo"].astype(jnp.bfloat16),
        "w1": p["w1"].astype(jnp.bfloat16),
        "w2": p["w2"].astype(jnp.bfloat16),
        "vecs": jnp.stack([p["bq"], p["bk"], p["bv"], p["bo"], p["b2"],
                           p["g1"], p["be1"], p["g2"], p["be2"]], axis=0).astype(jnp.float32),
        "b1": p["b1"].reshape(1, -1).astype(jnp.float32),
    }


# ----------------------------------------------------------------------------
# CodeLayer.forward equivalent (dict-in / dict-out glue)
# ----------------------------------------------------------------------------
def code_layer_forward(kwargs, emb_table, enc_params, eos_token_id=2):
    # batch.has_source  ->  'source' key present and non-empty
    if "source" not in kwargs or kwargs["source"].size == 0:
        return kwargs
    kwargs = dict(kwargs)
    packed = _pack_encoder_params(enc_params)
    emb, enc = _fused_code_layer_call(
        kwargs["source"].astype(jnp.int32), emb_table, packed)
    # Concatenation with the pre-existing slabs stays outside the kernel: the old
    # prefixes are pure data movement and never need the TensorCore / VMEM.
    if "tgt" in kwargs and kwargs["tgt"] is not None:
        kwargs["tgt"] = jnp.concatenate([kwargs["tgt"].astype(emb.dtype), emb], axis=1)
    else:
        kwargs["tgt"] = emb
    if "memory" in kwargs and kwargs["memory"] is not None:
        kwargs["memory"] = jnp.concatenate([kwargs["memory"].astype(enc.dtype), enc], axis=1)
    else:
        kwargs["memory"] = enc
    return kwargs


# ----------------------------------------------------------------------------
# Deterministic parameter construction + plain-JAX reference + demo
# ----------------------------------------------------------------------------
def make_params(key, vocab, hidden, ffn):
    keys = jax.random.split(key, 17)
    n = lambda k, shape, scale: (scale * jax.random.normal(k, shape)).astype(jnp.float32)
    emb_table = n(keys[0], (vocab, hidden), 0.02)
    enc = {
        "wq": n(keys[1], (hidden, hidden), 0.05), "bq": n(keys[7], (hidden,), 0.02),
        "wk": n(keys[2], (hidden, hidden), 0.05), "bk": n(keys[8], (hidden,), 0.02),
        "wv": n(keys[3], (hidden, hidden), 0.05), "bv": n(keys[9], (hidden,), 0.02),
        "wo": n(keys[4], (hidden, hidden), 0.05), "bo": n(keys[10], (hidden,), 0.02),
        "w1": n(keys[5], (hidden, ffn), 0.05),    "b1": n(keys[11], (ffn,), 0.02),
        "w2": n(keys[6], (ffn, hidden), 0.05),    "b2": n(keys[12], (hidden,), 0.02),
        "g1": (1.0 + 0.1 * jax.random.normal(keys[13], (hidden,))).astype(jnp.float32),
        "be1": n(keys[14], (hidden,), 0.02),
        "g2": (1.0 + 0.1 * jax.random.normal(keys[15], (hidden,))).astype(jnp.float32),
        "be2": n(keys[16], (hidden,), 0.02),
    }
    return emb_table, enc


def _reference_code_layer(source, table, p):
    """Pure-JAX reference with the same bf16 matmul casts as the kernel."""
    bf = lambda a: a.astype(jnp.bfloat16)
    mm = lambda a, w: jnp.dot(bf(a), bf(w), preferred_element_type=jnp.float32)
    emb = jnp.take(table, source, axis=0)                     # (B, S, H) f32
    B, S, H = emb.shape
    x2 = emb.reshape(B * S, H)
    scale = 1.0 / (float(H) ** 0.5)

    q = ((mm(x2, p["wq"]) + p["bq"]) * scale).reshape(B, S, H)
    k = (mm(x2, p["wk"]) + p["bk"]).reshape(B, S, H)
    v = (mm(x2, p["wv"]) + p["bv"]).reshape(B, S, H)
    s = jnp.einsum("bqd,bkd->bqk", bf(q), bf(k), preferred_element_type=jnp.float32)
    s = s - jnp.max(s, axis=-1, keepdims=True)
    prob = jnp.exp(s)
    prob = prob / jnp.sum(prob, axis=-1, keepdims=True)
    ctx = jnp.einsum("bqk,bkd->bqd", bf(prob), bf(v), preferred_element_type=jnp.float32)
    attn = mm(ctx.reshape(B * S, H), p["wo"]) + p["bo"]

    h = x2 + attn
    mu = h.mean(-1, keepdims=True)
    var = ((h - mu) ** 2).mean(-1, keepdims=True)
    h = (h - mu) * jax.lax.rsqrt(var + 1e-5) * p["g1"] + p["be1"]

    f = mm(h, p["w1"]) + p["b1"]
    f = jnp.maximum(f, 0.0)
    f = mm(f, p["w2"]) + p["b2"]

    y = h + f
    mu2 = y.mean(-1, keepdims=True)
    var2 = ((y - mu2) ** 2).mean(-1, keepdims=True)
    y = (y - mu2) * jax.lax.rsqrt(var2 + 1e-5) * p["g2"] + p["be2"]
    return emb, y.reshape(B, S, H)


if __name__ == "__main__":
    # H is a multiple of 128 so all stores are lane-dense (unmasked vst);
    # S is a multiple of 8 so (S, H) tiles satisfy the (8,128) block constraint.
    B, S, H, V, F = 2, 8, 128, 512, 256
    T0, M0 = 4, 4   # pre-existing tgt / memory lengths

    root = jax.random.PRNGKey(0)
    k_param, k_src, k_tgt, k_mem = jax.random.split(root, 4)
    emb_table, enc_params = make_params(k_param, V, H, F)

    kwargs = {
        "source": jax.random.randint(k_src, (B, S), 0, V, dtype=jnp.int32),
        "tgt": (0.1 * jax.random.normal(k_tgt, (B, T0, H))).astype(jnp.float32),
        "memory": (0.1 * jax.random.normal(k_mem, (B, M0, H))).astype(jnp.float32),
    }

    out = code_layer_forward(kwargs, emb_table, enc_params, eos_token_id=2)
    jax.block_until_ready(out["tgt"])
    jax.block_until_ready(out["memory"])

    assert out["tgt"].shape == (B, T0 + S, H), out["tgt"].shape
    assert out["memory"].shape == (B, M0 + S, H), out["memory"].shape

    ref_emb, ref_enc = _reference_code_layer(kwargs["source"], emb_table, enc_params)

    assert jnp.allclose(out["tgt"][:, :T0, :], kwargs["tgt"], atol=1e-6)
    assert jnp.allclose(out["tgt"][:, T0:, :], ref_emb, atol=1e-6)
    assert jnp.allclose(out["memory"][:, :M0, :], kwargs["memory"], atol=1e-6)
    assert jnp.allclose(out["memory"][:, M0:, :], ref_enc, atol=1e-2, rtol=1e-2)

    # Exercise the "no pre-existing tgt/memory" branch of the module as well.
    out2 = code_layer_forward({"source": kwargs["source"]}, emb_table, enc_params)
    jax.block_until_ready(out2["memory"])
    assert out2["tgt"].shape == (B, S, H)
    assert out2["memory"].shape == (B, S, H)
    assert jnp.allclose(out2["tgt"], ref_emb, atol=1e-6)
    assert jnp.allclose(out2["memory"], ref_enc, atol=1e-2, rtol=1e-2)

    print("KERNEL_OK")
</pallas_src>

<mosaic_0001>
module attributes {stable_mosaic.version = 11 : i64} {
  func.func @kernel(%arg0: i32, %arg1: memref<16xi32, #tpu.memory_space<smem>>, %arg2: memref<512x128xf32, #tpu.memory_space<vmem>>, %arg3: memref<128x384xbf16, #tpu.memory_space<vmem>>, %arg4: memref<128x128xbf16, #tpu.memory_space<vmem>>, %arg5: memref<128x256xbf16, #tpu.memory_space<vmem>>, %arg6: memref<256x128xbf16, #tpu.memory_space<vmem>>, %arg7: memref<9x128xf32, #tpu.memory_space<vmem>>, %arg8: memref<1x256xf32, #tpu.memory_space<vmem>>, %arg9: memref<1x8x128xf32, #tpu.memory_space<vmem>>, %arg10: memref<1x8x128xf32, #tpu.memory_space<vmem>>, %arg11: memref<8x128xf32, #tpu.memory_space<vmem>>) attributes {dimension_semantics = [#tpu.dimension_semantics<parallel>], iteration_bounds = array<i64: 2>, scalar_prefetch = 1 : i64, scratch_operands = 1 : i64, tpu.core_type = #tpu.core_type<tc>, window_params = [{pipeline_mode = #tpu.pipeline_mode<synchronous>, transform_indices = @transform_0, window_bounds = array<i64: 512, 128>}, {pipeline_mode = #tpu.pipeline_mode<synchronous>, transform_indices = @transform_1, window_bounds = array<i64: 128, 384>}, {pipeline_mode = #tpu.pipeline_mode<synchronous>, transform_indices = @transform_2, window_bounds = array<i64: 128, 128>}, {pipeline_mode = #tpu.pipeline_mode<synchronous>, transform_indices = @transform_3, window_bounds = array<i64: 128, 256>}, {pipeline_mode = #tpu.pipeline_mode<synchronous>, transform_indices = @transform_4, window_bounds = array<i64: 256, 128>}, {pipeline_mode = #tpu.pipeline_mode<synchronous>, transform_indices = @transform_5, window_bounds = array<i64: 9, 128>}, {pipeline_mode = #tpu.pipeline_mode<synchronous>, transform_indices = @transform_6, window_bounds = array<i64: 1, 256>}, {transform_indices = @transform_7, window_bounds = array<i64: 1, 8, 128>}, {transform_indices = @transform_8, window_bounds = array<i64: 1, 8, 128>}]} {
    %c0 = arith.constant 0 : index
    %c0_0 = arith.constant 0 : index
    %0 = vector.load %arg7[%c0, %c0_0] : memref<9x128xf32, #tpu.memory_space<vmem>>, vector<1x128xf32>
    %c1 = arith.constant 1 : index
    %c0_1 = arith.constant 0 : index
    %1 = vector.load %arg7[%c1, %c0_1] : memref<9x128xf32, #tpu.memory_space<vmem>>, vector<1x128xf32>
    %c2 = arith.constant 2 : index
    %c0_2 = arith.constant 0 : index
    %2 = vector.load %arg7[%c2, %c0_2] : memref<9x128xf32, #tpu.memory_space<vmem>>, vector<1x128xf32>
    %c3 = arith.constant 3 : index
    %c0_3 = arith.constant 0 : index
    %3 = vector.load %arg7[%c3, %c0_3] : memref<9x128xf32, #tpu.memory_space<vmem>>, vector<1x128xf32>
    %c4 = arith.constant 4 : index
    %c0_4 = arith.constant 0 : index
    %4 = vector.load %arg7[%c4, %c0_4] : memref<9x128xf32, #tpu.memory_space<vmem>>, vector<1x128xf32>
    %c5 = arith.constant 5 : index
    %c0_5 = arith.constant 0 : index
    %5 = vector.load %arg7[%c5, %c0_5] : memref<9x128xf32, #tpu.memory_space<vmem>>, vector<1x128xf32>
    %c6 = arith.constant 6 : index
    %c0_6 = arith.constant 0 : index
    %6 = vector.load %arg7[%c6, %c0_6] : memref<9x128xf32, #tpu.memory_space<vmem>>, vector<1x128xf32>
    %c7 = arith.constant 7 : index
    %c0_7 = arith.constant 0 : index
    %7 = vector.load %arg7[%c7, %c0_7] : memref<9x128xf32, #tpu.memory_space<vmem>>, vector<1x128xf32>
    %c8 = arith.constant 8 : index
    %c0_8 = arith.constant 0 : index
    %8 = vector.load %arg7[%c8, %c0_8] : memref<9x128xf32, #tpu.memory_space<vmem>>, vector<1x128xf32>
    %c8_i32 = arith.constant 8 : i32
    %9 = arith.muli %arg0, %c8_i32 : i32
    %c0_i32 = arith.constant 0 : i32
    %10 = arith.addi %9, %c0_i32 : i32
    %11 = arith.index_cast %10 : i32 to index
    %12 = memref.load %arg1[%11] : memref<16xi32, #tpu.memory_space<smem>>
    %c0_i32_9 = arith.constant 0 : i32
    %13 = arith.maxsi %12, %c0_i32_9 : i32
    %c511_i32 = arith.constant 511 : i32
    %14 = arith.minsi %13, %c511_i32 : i32
    %15 = arith.index_cast %14 : i32 to index
    %c0_10 = arith.constant 0 : index
    %16 = vector.load %arg2[%15, %c0_10] : memref<512x128xf32, #tpu.memory_space<vmem>>, vector<1x128xf32>
    %c0_11 = arith.constant 0 : index
    %c0_12 = arith.constant 0 : index
    %17 = vector.load %arg11[%c0_11, %c0_12] : memref<8x128xf32, #tpu.memory_space<vmem>>, vector<1x128xf32>
    tpu.vector_store %arg11[%c0_11, %c0_12], %16 {strides = array<i32>} : memref<8x128xf32, #tpu.memory_space<vmem>>, vector<1x128xf32>,
    %c1_i32 = arith.constant 1 : i32
    %18 = arith.addi %9, %c1_i32 : i32
    %19 = arith.index_cast %18 : i32 to index
    %20 = memref.load %arg1[%19] : memref<16xi32, #tpu.memory_space<smem>>
    %c0_i32_13 = arith.constant 0 : i32
    %21 = arith.maxsi %20, %c0_i32_13 : i32
    %c511_i32_14 = arith.constant 511 : i32
    %22 = arith.minsi %21, %c511_i32_14 : i32
    %23 = arith.index_cast %22 : i32 to index
    %c0_15 = arith.constant 0 : index
    %24 = vector.load %arg2[%23, %c0_15] : memref<512x128xf32, #tpu.memory_space<vmem>>, vector<1x128xf32>
    %c1_16 = arith.constant 1 : index
    %c0_17 = arith.constant 0 : index
    %25 = vector.load %arg11[%c1_16, %c0_17] : memref<8x128xf32, #tpu.memory_space<vmem>>, vector<1x128xf32>
    tpu.vector_store %arg11[%c1_16, %c0_17], %24 {strides = array<i32>} : memref<8x128xf32, #tpu.memory_space<vmem>>, vector<1x128xf32>,
    %c2_i32 = arith.constant 2 : i32
    %26 = arith.addi %9, %c2_i32 : i32
    %27 = arith.index_cast %26 : i32 to index
    %28 = memref.load %arg1[%27] : memref<16xi32, #tpu.memory_space<smem>>
    %c0_i32_18 = arith.constant 0 : i32
    %29 = arith.maxsi %28, %c0_i32_18 : i32
    %c511_i32_19 = arith.constant 511 : i32
    %30 = arith.minsi %29, %c511_i32_19 : i32
    %31 = arith.index_cast %30 : i32 to index
    %c0_20 = arith.constant 0 : index
    %32 = vector.load %arg2[%31, %c0_20] : memref<512x128xf32, #tpu.memory_space<vmem>>, vector<1x128xf32>
    %c2_21 = arith.constant 2 : index
    %c0_22 = arith.constant 0 : index
    %33 = vector.load %arg11[%c2_21, %c0_22] : memref<8x128xf32, #tpu.memory_space<vmem>>, vector<1x128xf32>
    tpu.vector_store %arg11[%c2_21, %c0_22], %32 {strides = array<i32>} : memref<8x128xf32, #tpu.memory_space<vmem>>, vector<1x128xf32>,
    %c3_i32 = arith.constant 3 : i32
    %34 = arith.addi %9, %c3_i32 : i32
    %35 = arith.index_cast %34 : i32 to index
    %36 = memref.load %arg1[%35] : memref<16xi32, #tpu.memory_space<smem>>
    %c0_i32_23 = arith.constant 0 : i32
    %37 = arith.maxsi %36, %c0_i32_23 : i32
    %c511_i32_24 = arith.constant 511 : i32
    %38 = arith.minsi %37, %c511_i32_24 : i32
    %39 = arith.index_cast %38 : i32 to index
    %c0_25 = arith.constant 0 : index
    %40 = vector.load %arg2[%39, %c0_25] : memref<512x128xf32, #tpu.memory_space<vmem>>, vector<1x128xf32>
    %c3_26 = arith.constant 3 : index
    %c0_27 = arith.constant 0 : index
    %41 = vector.load %arg11[%c3_26, %c0_27] : memref<8x128xf32, #tpu.memory_space<vmem>>, vector<1x128xf32>
    tpu.vector_store %arg11[%c3_26, %c0_27], %40 {strides = array<i32>} : memref<8x128xf32, #tpu.memory_space<vmem>>, vector<1x128xf32>,
    %c4_i32 = arith.constant 4 : i32
    %42 = arith.addi %9, %c4_i32 : i32
    %43 = arith.index_cast %42 : i32 to index
    %44 = memref.load %arg1[%43] : memref<16xi32, #tpu.memory_space<smem>>
    %c0_i32_28 = arith.constant 0 : i32
    %45 = arith.maxsi %44, %c0_i32_28 : i32
    %c511_i32_29 = arith.constant 511 : i32
    %46 = arith.minsi %45, %c511_i32_29 : i32
    %47 = arith.index_cast %46 : i32 to index
    %c0_30 = arith.constant 0 : index
    %48 = vector.load %arg2[%47, %c0_30] : memref<512x128xf32, #tpu.memory_space<vmem>>, vector<1x128xf32>
    %c4_31 = arith.constant 4 : index
    %c0_32 = arith.constant 0 : index
    %49 = vector.load %arg11[%c4_31, %c0_32] : memref<8x128xf32, #tpu.memory_space<vmem>>, vector<1x128xf32>
    tpu.vector_store %arg11[%c4_31, %c0_32], %48 {strides = array<i32>} : memref<8x128xf32, #tpu.memory_space<vmem>>, vector<1x128xf32>,
    %c5_i32 = arith.constant 5 : i32
    %50 = arith.addi %9, %c5_i32 : i32
    %51 = arith.index_cast %50 : i32 to index
    %52 = memref.load %arg1[%51] : memref<16xi32, #tpu.memory_space<smem>>
    %c0_i32_33 = arith.constant 0 : i32
    %53 = arith.maxsi %52, %c0_i32_33 : i32
    %c511_i32_34 = arith.constant 511 : i32
    %54 = arith.minsi %53, %c511_i32_34 : i32
    %55 = arith.index_cast %54 : i32 to index
    %c0_35 = arith.constant 0 : index
    %56 = vector.load %arg2[%55, %c0_35] : memref<512x128xf32, #tpu.memory_space<vmem>>, vector<1x128xf32>
    %c5_36 = arith.constant 5 : index
    %c0_37 = arith.constant 0 : index
    %57 = vector.load %arg11[%c5_36, %c0_37] : memref<8x128xf32, #tpu.memory_space<vmem>>, vector<1x128xf32>
    tpu.vector_store %arg11[%c5_36, %c0_37], %56 {strides = array<i32>} : memref<8x128xf32, #tpu.memory_space<vmem>>, vector<1x128xf32>,
    %c6_i32 = arith.constant 6 : i32
    %58 = arith.addi %9, %c6_i32 : i32
    %59 = arith.index_cast %58 : i32 to index
    %60 = memref.load %arg1[%59] : memref<16xi32, #tpu.memory_space<smem>>
    %c0_i32_38 = arith.constant 0 : i32
    %61 = arith.maxsi %60, %c0_i32_38 : i32
    %c511_i32_39 = arith.constant 511 : i32
    %62 = arith.minsi %61, %c511_i32_39 : i32
    %63 = arith.index_cast %62 : i32 to index
    %c0_40 = arith.constant 0 : index
    %64 = vector.load %arg2[%63, %c0_40] : memref<512x128xf32, #tpu.memory_space<vmem>>, vector<1x128xf32>
    %c6_41 = arith.constant 6 : index
    %c0_42 = arith.constant 0 : index
    %65 = vector.load %arg11[%c6_41, %c0_42] : memref<8x128xf32, #tpu.memory_space<vmem>>, vector<1x128xf32>
    tpu.vector_store %arg11[%c6_41, %c0_42], %64 {strides = array<i32>} : memref<8x128xf32, #tpu.memory_space<vmem>>, vector<1x128xf32>,
    %c7_i32 = arith.constant 7 : i32
    %66 = arith.addi %9, %c7_i32 : i32
    %67 = arith.index_cast %66 : i32 to index
    %68 = memref.load %arg1[%67] : memref<16xi32, #tpu.memory_space<smem>>
    %c0_i32_43 = arith.constant 0 : i32
    %69 = arith.maxsi %68, %c0_i32_43 : i32
    %c511_i32_44 = arith.constant 511 : i32
    %70 = arith.minsi %69, %c511_i32_44 : i32
    %71 = arith.index_cast %70 : i32 to index
    %c0_45 = arith.constant 0 : index
    %72 = vector.load %arg2[%71, %c0_45] : memref<512x128xf32, #tpu.memory_space<vmem>>, vector<1x128xf32>
    %c7_46 = arith.constant 7 : index
    %c0_47 = arith.constant 0 : index
    %73 = vector.load %arg11[%c7_46, %c0_47] : memref<8x128xf32, #tpu.memory_space<vmem>>, vector<1x128xf32>
    tpu.vector_store %arg11[%c7_46, %c0_47], %72 {strides = array<i32>} : memref<8x128xf32, #tpu.memory_space<vmem>>, vector<1x128xf32>,
    %c0_48 = arith.constant 0 : index
    %c0_49 = arith.constant 0 : index
    %74 = vector.load %arg11[%c0_48, %c0_49] : memref<8x128xf32, #tpu.memory_space<vmem>>, vector<8x128xf32>
    %c0_50 = arith.constant 0 : index
    %c0_51 = arith.constant 0 : index
    %c0_52 = arith.constant 0 : index
    %75 = vector.load %arg9[%c0_50, %c0_51, %c0_52] : memref<1x8x128xf32, #tpu.memory_space<vmem>>, vector<1x8x128xf32>
    %76 = vector.shape_cast %75 : vector<1x8x128xf32> to vector<8x128xf32>
    %77 = vector.shape_cast %74 : vector<8x128xf32> to vector<1x8x128xf32>
    tpu.vector_store %arg9[%c0_50, %c0_51, %c0_52], %77 {strides = array<i32>} : memref<1x8x128xf32, #tpu.memory_space<vmem>>, vector<1x8x128xf32>,
    %78 = arith.truncf %74 : vector<8x128xf32> to vector<8x128xbf16>
    %c0_53 = arith.constant 0 : index
    %c0_54 = arith.constant 0 : index
    %79 = vector.load %arg3[%c0_53, %c0_54] : memref<128x384xbf16, #tpu.memory_space<vmem>>, vector<128x384xbf16>
    %cst = arith.constant dense<0.000000e+00> : vector<8x384xf32>
    %80 = tpu.matmul %78, %79, %cst {dimension_numbers = #tpu.dot_dimension_numbers<[1], [0], [0], [1], [0, 0, 1, 1], [], []>} : vector<8x128xbf16>, vector<128x384xbf16>, vector<8x384xf32> -> vector<8x384xf32>
    %81 = vector.extract_strided_slice %80 {offsets = [0, 0], sizes = [8, 128], strides = [1, 1]} : vector<8x384xf32> to vector<8x128xf32>
    %82 = vector.broadcast %0 : vector<1x128xf32> to vector<8x128xf32>
    %83 = arith.addf %81, %82 : vector<8x128xf32>
    %cst_55 = arith.constant 0.0883883461 : f32
    %84 = vector.broadcast %cst_55 : f32 to vector<8x128xf32>
    %85 = arith.mulf %83, %84 : vector<8x128xf32>
    %86 = vector.extract_strided_slice %80 {offsets = [0, 128], sizes = [8, 128], strides = [1, 1]} : vector<8x384xf32> to vector<8x128xf32>
    %87 = vector.broadcast %1 : vector<1x128xf32> to vector<8x128xf32>
    %88 = arith.addf %86, %87 : vector<8x128xf32>
    %89 = vector.extract_strided_slice %80 {offsets = [0, 256], sizes = [8, 128], strides = [1, 1]} : vector<8x384xf32> to vector<8x128xf32>
    %90 = vector.broadcast %2 : vector<1x128xf32> to vector<8x128xf32>
    %91 = arith.addf %89, %90 : vector<8x128xf32>
    %92 = arith.truncf %85 : vector<8x128xf32> to vector<8x128xbf16>
    %93 = arith.truncf %88 : vector<8x128xf32> to vector<8x128xbf16>
    %cst_56 = arith.constant dense<0.000000e+00> : vector<8x8xf32>
    %94 = tpu.matmul %92, %93, %cst_56 {dimension_numbers = #tpu.dot_dimension_numbers<[1], [1], [0], [0], [0, 0, 1, 0], [], []>} : vector<8x128xbf16>, vector<8x128xbf16>, vector<8x8xf32> -> vector<8x8xf32>
    %cst_57 = arith.constant dense<0xFF800000> : vector<8xf32>
    %95 = vector.multi_reduction <maximumf>, %94, %cst_57 [1] : vector<8x8xf32> to vector<8xf32>
    %96 = vector.shape_cast %95 : vector<8xf32> to vector<8x1xf32>
    %97 = vector.broadcast %96 : vector<8x1xf32> to vector<8x8xf32>
    %98 = arith.subf %94, %97 : vector<8x8xf32>
    %99 = math.exp %98 : vector<8x8xf32>
    %cst_58 = arith.constant dense<0.000000e+00> : vector<8xf32>
    %100 = vector.multi_reduction <add>, %99, %cst_58 [1] : vector<8x8xf32> to vector<8xf32>
    %101 = vector.shape_cast %100 : vector<8xf32> to vector<8x1xf32>
    %102 = tpu.reciprocal %101 {approx = true} : vector<8x1xf32> -> vector<8x1xf32>
    %103 = vector.broadcast %102 : vector<8x1xf32> to vector<8x8xf32>
    %104 = arith.mulf %99, %103 : vector<8x8xf32>
    %105 = arith.truncf %104 : vector<8x8xf32> to vector<8x8xbf16>
    %106 = arith.truncf %91 : vector<8x128xf32> to vector<8x128xbf16>
    %cst_59 = arith.constant dense<0.000000e+00> : vector<8x128xf32>
    %107 = tpu.matmul %105, %106, %cst_59 {dimension_numbers = #tpu.dot_dimension_numbers<[1], [0], [0], [1], [0, 0, 1, 1], [], []>} : vector<8x8xbf16>, vector<8x128xbf16>, vector<8x128xf32> -> vector<8x128xf32>
    %108 = arith.truncf %107 : vector<8x128xf32> to vector<8x128xbf16>
    %c0_60 = arith.constant 0 : index
    %c0_61 = arith.constant 0 : index
    %109 = vector.load %arg4[%c0_60, %c0_61] : memref<128x128xbf16, #tpu.memory_space<vmem>>, vector<128x128xbf16>
    %cst_62 = arith.constant dense<0.000000e+00> : vector<8x128xf32>
    %110 = tpu.matmul %108, %109, %cst_62 {dimension_numbers = #tpu.dot_dimension_numbers<[1], [0], [0], [1], [0, 0, 1, 1], [], []>} : vector<8x128xbf16>, vector<128x128xbf16>, vector<8x128xf32> -> vector<8x128xf32>
    %111 = vector.broadcast %3 : vector<1x128xf32> to vector<8x128xf32>
    %112 = arith.addf %110, %111 : vector<8x128xf32>
    %113 = arith.addf %74, %112 : vector<8x128xf32>
    %cst_63 = arith.constant dense<0.000000e+00> : vector<8xf32>
    %114 = vector.multi_reduction <add>, %113, %cst_63 [1] : vector<8x128xf32> to vector<8xf32>
    %115 = vector.shape_cast %114 : vector<8xf32> to vector<8x1xf32>
    %cst_64 = arith.constant 1.280000e+02 : f32
    %116 = vector.broadcast %cst_64 : f32 to vector<8x1xf32>
    %117 = arith.divf %115, %116 : vector<8x1xf32>
    %118 = vector.broadcast %117 : vector<8x1xf32> to vector<8x128xf32>
    %119 = arith.subf %113, %118 : vector<8x128xf32>
    %120 = arith.mulf %119, %119 : vector<8x128xf32>
    %cst_65 = arith.constant dense<0.000000e+00> : vector<8xf32>
    %121 = vector.multi_reduction <add>, %120, %cst_65 [1] : vector<8x128xf32> to vector<8xf32>
    %122 = vector.shape_cast %121 : vector<8xf32> to vector<8x1xf32>
    %cst_66 = arith.constant 1.280000e+02 : f32
    %123 = vector.broadcast %cst_66 : f32 to vector<8x1xf32>
    %124 = arith.divf %122, %123 : vector<8x1xf32>
    %125 = vector.broadcast %117 : vector<8x1xf32> to vector<8x128xf32>
    %126 = arith.subf %113, %125 : vector<8x128xf32>
    %cst_67 = arith.constant 9.99999974E-6 : f32
    %127 = vector.broadcast %cst_67 : f32 to vector<8x1xf32>
    %128 = arith.addf %124, %127 : vector<8x1xf32>
    %129 = math.rsqrt %128 : vector<8x1xf32>
    %130 = vector.broadcast %129 : vector<8x1xf32> to vector<8x128xf32>
    %131 = arith.mulf %126, %130 : vector<8x128xf32>
    %132 = vector.broadcast %5 : vector<1x128xf32> to vector<8x128xf32>
    %133 = arith.mulf %131, %132 : vector<8x128xf32>
    %134 = vector.broadcast %6 : vector<1x128xf32> to vector<8x128xf32>
    %135 = arith.addf %133, %134 : vector<8x128xf32>
    %136 = arith.truncf %135 : vector<8x128xf32> to vector<8x128xbf16>
    %c0_68 = arith.constant 0 : index
    %c0_69 = arith.constant 0 : index
    %137 = vector.load %arg5[%c0_68, %c0_69] : memref<128x256xbf16, #tpu.memory_space<vmem>>, vector<128x256xbf16>
    %cst_70 = arith.constant dense<0.000000e+00> : vector<8x256xf32>
    %138 = tpu.matmul %136, %137, %cst_70 {dimension_numbers = #tpu.dot_dimension_numbers<[1], [0], [0], [1], [0, 0, 1, 1], [], []>} : vector<8x128xbf16>, vector<128x256xbf16>, vector<8x256xf32> -> vector<8x256xf32>
    %c0_71 = arith.constant 0 : index
    %c0_72 = arith.constant 0 : index
    %139 = vector.load %arg8[%c0_71, %c0_72] : memref<1x256xf32, #tpu.memory_space<vmem>>, vector<1x256xf32>
    %140 = vector.broadcast %139 : vector<1x256xf32> to vector<8x256xf32>
    %141 = arith.addf %138, %140 : vector<8x256xf32>
    %cst_73 = arith.constant 0.000000e+00 : f32
    %142 = vector.broadcast %cst_73 : f32 to vector<8x256xf32>
    %143 = arith.maximumf %141, %142 : vector<8x256xf32>
    %144 = arith.truncf %143 : vector<8x256xf32> to vector<8x256xbf16>
    %c0_74 = arith.constant 0 : index
    %c0_75 = arith.constant 0 : index
    %145 = vector.load %arg6[%c0_74, %c0_75] : memref<256x128xbf16, #tpu.memory_space<vmem>>, vector<256x128xbf16>
    %cst_76 = arith.constant dense<0.000000e+00> : vector<8x128xf32>
    %146 = tpu.matmul %144, %145, %cst_76 {dimension_numbers = #tpu.dot_dimension_numbers<[1], [0], [0], [1], [0, 0, 1, 1], [], []>} : vector<8x256xbf16>, vector<256x128xbf16>, vector<8x128xf32> -> vector<8x128xf32>
    %147 = vector.broadcast %4 : vector<1x128xf32> to vector<8x128xf32>
    %148 = arith.addf %146, %147 : vector<8x128xf32>
    %149 = arith.addf %135, %148 : vector<8x128xf32>
    %cst_77 = arith.constant dense<0.000000e+00> : vector<8xf32>
    %150 = vector.multi_reduction <add>, %149, %cst_77 [1] : vector<8x128xf32> to vector<8xf32>
    %151 = vector.shape_cast %150 : vector<8xf32> to vector<8x1xf32>
    %cst_78 = arith.constant 1.280000e+02 : f32
    %152 = vector.broadcast %cst_78 : f32 to vector<8x1xf32>
    %153 = arith.divf %151, %152 : vector<8x1xf32>
    %154 = vector.broadcast %153 : vector<8x1xf32> to vector<8x128xf32>
    %155 = arith.subf %149, %154 : vector<8x128xf32>
    %156 = arith.mulf %155, %155 : vector<8x128xf32>
    %cst_79 = arith.constant dense<0.000000e+00> : vector<8xf32>
    %157 = vector.multi_reduction <add>, %156, %cst_79 [1] : vector<8x128xf32> to vector<8xf32>
    %158 = vector.shape_cast %157 : vector<8xf32> to vector<8x1xf32>
    %cst_80 = arith.constant 1.280000e+02 : f32
    %159 = vector.broadcast %cst_80 : f32 to vector<8x1xf32>
    %160 = arith.divf %158, %159 : vector<8x1xf32>
    %161 = vector.broadcast %153 : vector<8x1xf32> to vector<8x128xf32>
    %162 = arith.subf %149, %161 : vector<8x128xf32>
    %cst_81 = arith.constant 9.99999974E-6 : f32
    %163 = vector.broadcast %cst_81 : f32 to vector<8x1xf32>
    %164 = arith.addf %160, %163 : vector<8x1xf32>
    %165 = math.rsqrt %164 : vector<8x1xf32>
    %166 = vector.broadcast %165 : vector<8x1xf32> to vector<8x128xf32>
    %167 = arith.mulf %162, %166 : vector<8x128xf32>
    %168 = vector.broadcast %7 : vector<1x128xf32> to vector<8x128xf32>
    %169 = arith.mulf %167, %168 : vector<8x128xf32>
    %170 = vector.broadcast %8 : vector<1x128xf32> to vector<8x128xf32>
    %171 = arith.addf %169, %170 : vector<8x128xf32>
    %c0_82 = arith.constant 0 : index
    %c0_83 = arith.constant 0 : index
    %c0_84 = arith.constant 0 : index
    %172 = vector.load %arg10[%c0_82, %c0_83, %c0_84] : memref<1x8x128xf32, #tpu.memory_space<vmem>>, vector<1x8x128xf32>
    %173 = vector.shape_cast %172 : vector<1x8x128xf32> to vector<8x128xf32>
    %174 = vector.shape_cast %171 : vector<8x128xf32> to vector<1x8x128xf32>
    tpu.vector_store %arg10[%c0_82, %c0_83, %c0_84], %174 {strides = array<i32>} : memref<1x8x128xf32, #tpu.memory_space<vmem>>, vector<1x8x128xf32>,
    return
  }
  func.func @transform_0(%arg0: i32, %arg1: memref<16xi32, #tpu.memory_space<smem>>) -> (i32, i32) {
    %c0_i32 = arith.constant 0 : i32
    %c0_i32_0 = arith.constant 0 : i32
    %c0_i32_1 = arith.constant 0 : i32
    return %c0_i32, %c0_i32_0 : i32, i32
  }
  func.func @transform_1(%arg0: i32, %arg1: memref<16xi32, #tpu.memory_space<smem>>) -> (i32, i32) {
    %c0_i32 = arith.constant 0 : i32
    %c0_i32_0 = arith.constant 0 : i32
    %c0_i32_1 = arith.constant 0 : i32
    return %c0_i32, %c0_i32_0 : i32, i32
  }
  func.func @transform_2(%arg0: i32, %arg1: memref<16xi32, #tpu.memory_space<smem>>) -> (i32, i32) {
    %c0_i32 = arith.constant 0 : i32
    %c0_i32_0 = arith.constant 0 : i32
    %c0_i32_1 = arith.constant 0 : i32
    return %c0_i32, %c0_i32_0 : i32, i32
  }
  func.func @transform_3(%arg0: i32, %arg1: memref<16xi32, #tpu.memory_space<smem>>) -> (i32, i32) {
    %c0_i32 = arith.constant 0 : i32
    %c0_i32_0 = arith.constant 0 : i32
    %c0_i32_1 = arith.constant 0 : i32
    return %c0_i32, %c0_i32_0 : i32, i32
  }
  func.func @transform_4(%arg0: i32, %arg1: memref<16xi32, #tpu.memory_space<smem>>) -> (i32, i32) {
    %c0_i32 = arith.constant 0 : i32
    %c0_i32_0 = arith.constant 0 : i32
    %c0_i32_1 = arith.constant 0 : i32
    return %c0_i32, %c0_i32_0 : i32, i32
  }
  func.func @transform_5(%arg0: i32, %arg1: memref<16xi32, #tpu.memory_space<smem>>) -> (i32, i32) {
    %c0_i32 = arith.constant 0 : i32
    %c0_i32_0 = arith.constant 0 : i32
    %c0_i32_1 = arith.constant 0 : i32
    return %c0_i32, %c0_i32_0 : i32, i32
  }
  func.func @transform_6(%arg0: i32, %arg1: memref<16xi32, #tpu.memory_space<smem>>) -> (i32, i32) {
    %c0_i32 = arith.constant 0 : i32
    %c0_i32_0 = arith.constant 0 : i32
    %c0_i32_1 = arith.constant 0 : i32
    return %c0_i32, %c0_i32_0 : i32, i32
  }
  func.func @transform_7(%arg0: i32, %arg1: memref<16xi32, #tpu.memory_space<smem>>) -> (i32, i32, i32) {
    %c0_i32 = arith.constant 0 : i32
    %c0_i32_0 = arith.constant 0 : i32
    %c0_i32_1 = arith.constant 0 : i32
    return %arg0, %c0_i32, %c0_i32_0 : i32, i32, i32
  }
  func.func @transform_8(%arg0: i32, %arg1: memref<16xi32, #tpu.memory_space<smem>>) -> (i32, i32, i32) {
    %c0_i32 = arith.constant 0 : i32
    %c0_i32_0 = arith.constant 0 : i32
    %c0_i32_1 = arith.constant 0 : i32
    return %arg0, %c0_i32, %c0_i32_0 : i32, i32, i32
  }
}

</mosaic_0001>

<bundles_post_ra>
// kernel: tpu_custom_call.1
= control target key start
LH: loop header
LB: loop body
LE: loop exit
PB: predicated region body
PF: predicated region fallthrough
CT: control target
= control target key end

     0   :  { %s2608_s0 = inlined_call_operand.hbm [shape: s32[16], index: 0, kind: input, shape index: {}]   ;;  %s2609_s1 = inlined_call_operand.hbm [shape: f32[512,128], index: 1, kind: input, shape index: {}]   ;;  %s2610_s2 = inlined_call_operand.hbm [shape: bf16[128,384], index: 2, kind: input, shape index: {}]   ;;  %s2611_s3 = inlined_call_operand.hbm [shape: bf16[128,128], index: 3, kind: input, shape index: {}]   ;;  %s2612_s4 = inlined_call_operand.hbm [shape: bf16[128,256], index: 4, kind: input, shape index: {}]   ;;  %s2613_s5 = inlined_call_operand.hbm [shape: bf16[256,128], index: 5, kind: input, shape index: {}]   ;;  %s2614_s6 = inlined_call_operand.vmem [shape: f32[9,128], index: 6, kind: input, shape index: {}]   ;;  %s2615_s7 = inlined_call_operand.vmem [shape: f32[1,256], index: 7, kind: input, shape index: {}]   ;;  %s2616_s8 = inlined_call_operand.hbm [shape: f32[2,8,128], index: 8, kind: output, shape index: {0}]   ;;  %s2617_s9 = inlined_call_operand.hbm [shape: f32[2,8,128], index: 9, kind: output, shape index: {1}]  }
   0x1   :  { %s1909_s11 = scalar_lea.hbm %s2608_s0, 16 }
   0x2   :  { %p1910_p0 = scmp.ne.s32.totalorder %s2608_s0, %s1909_s11  ;;  %p1913_p1 = scmp.lt.u32.totalorder %s1909_s11, %s2608_s0 }
   0x4   :  { %p1915_p2 = pnand %p1913_p1, %p1910_p0 }
   0x6   :  { %1918 = shalt.err (!%p1915_p2)  }
   0x7   :  { %s2169_s16 = smov [#allocation4]  }
   0x8   :  { %16 = dma.hbm_to_smem %s2608_s0, 16, %s2169_s16, [#allocation3] }
   0x9   :  { %2131 = dma.done.wait [#allocation3], 16 }
   0xa   :  { %2132 = vsyncadd [#allocation3], 4294967280 }
   0xb   :  { %18 = sfence }
   0xc   :  { %19 = vsyncpa [#allocation6], 0 }
   0xd   :  { %20 = vsyncpa [#allocation9], 0 }
   0xe   :  { %21 = vsyncpa [#allocation12], 0 }
   0xf   :  { %22 = vsyncpa [#allocation7], 0 }
  0x10   :  { %24 = vsyncpa [#allocation7 + $0x1], 0 }
  0x11   :  { %25 = vsyncpa [#allocation16], 0 }
  0x12   :  { %27 = vsyncpa [#allocation16 + $0x1], 0  ;;  %s2248_s19 = smov 0   ;;  %s2250_s20 = smov 0  }
  0x13   :  { %s2252_s21 = smov 0   ;;  %s2254_s22 = smov 0  }
  0x14 LB: > { %2626 = sst [smem:[#allocation23_spill]] %s2155_s19  ;;  %s2269_s0 = sadd.s32 4294967295, %s2167_s22   ;;  %s2167_s22 = sphi %s2254_s22, %s2647_s22   ;;  %s2163_s21 = sphi %s2252_s21, %s2649_s21   ;;  %s2159_s20 = sphi %s2250_s20, %s2651_s20   ;;  %s2155_s19 = sphi %s2248_s19, %s2650_s19  }
  0x15   : > { %2627 = sst [smem:[#allocation24_spill]] %s2163_s21  ;;  %s1468_s23 = sadd.s32 4294967294, %s2167_s22  }
  0x16   : > { %s2273_s24 = sadd.s32 1, %s2167_s22   ;;  %s187_s25 = sadd.s32 1, %s2163_s21 }
  0x17   : > { %2628 = sst [smem:[#allocation25_spill]] %s2273_s24  ;;  %s184_s26 = ssub.s32 %s2167_s22, %s2273_s24 }
  0x18   : > { %p197_p3 = scmp.ne.s32.totalorder %s2163_s21, %s2159_s20  ;;  %p185_p4 = scmp.eq.s32.totalorder %s184_s26, 0 }
  0x19   : > { %p198_p5 = scmp.eq.s32.totalorder %s2269_s0, 1  ;;  %p203_p6 = scmp.ne.s32.totalorder %s2159_s20, %s2155_s19 }
  0x1a   : > { %p204_p7 = scmp.eq.s32.totalorder %s1468_s23, 1  ;;  %p1469_p10 = scmp.ge.s32.totalorder %s2167_s22, 1 }
  0x1b   : > { %s2284_s27 = scalar_select %p185_p4, %s2163_s21, %s187_s25  }
  0x1c   : > { %p2286_p8 = por %p198_p5, %p197_p3  ;;  %p2290_p9 = por %p204_p7, %p203_p6 }
  0x1d   : > { %2629 = sst [smem:[#allocation26_spill]] %s2284_s27  ;;  %p237_p11 = scmp.lt.s32.totalorder %s2167_s22, 3 }
  0x1e   : > { %s2630_s28 = scalar_select %p2286_p8, 1, 0 }
  0x1f   : > { %s2631_s29 = scalar_select %p2290_p9, 1, 0 }
  0x20   : > { %p2618_p12 = scmp.eq.s32.totalorder %s2269_s0, 0  ;;  %p2297_p13 = pnand %p1469_p10, %p237_p11 }
  0x21   : > { %2632 = sst [smem:[#allocation27_spill]] %s2631_s29  ;;  %s2170_s10 = smov [#allocation8]  }
  0x22   : > { %s2633_s30 = scalar_select %p2297_p13, 1, 0 }
  0x23   : > { %s262_s11 = sshll.u32 %s2170_s10, 4  ;;  %p1740_p0 = pneg %p2297_p13  ;;  %s263_s11 = int_to_ptr.vmem [resolvable:$true] %s262_s11 }
  0x24   : > { %s2171_s13 = smov [#allocation11]   ;;  %s1919_s17 = scalar_lea.hbm %s2610_s2, 3072 }
  0x25   : > { %p2305_p1 = pnand %p2618_p12, %p1740_p0  ;;  %s288_s14 = sshll.u32 %s2171_s13, 4  ;;  %s289_s14 = int_to_ptr.vmem [resolvable:$true] %s288_s14 }
  0x26   : > { %p1920_p2 = scmp.ne.s32.totalorder %s2610_s2, %s1919_s17  ;;  %p1926_p6 = scmp.lt.u32.totalorder %s1919_s17, %s2610_s2 }
  0x27   : > { %p2317_p3 = pneg %p2305_p1 }
  0x29   : > { %p1922_p4 = pnand %p2317_p3, %p1920_p2 }
  0x2b   : > { %p1923_p5 = pneg %p1922_p4 }
  0x2d   : > { %p1928_p7 = pnand %p1926_p6, %p1923_p5 }
  0x2f   : > { %1931 = shalt.err (!%p1928_p7)
}
  0x30   : > { %s1932_s13 = scalar_lea.vmem %s263_s11, 3072  ;;  %p1940_p12 = scmp.lt.s32.totalorder %s263_s11, %s263_s11 }
  0x31   : > { %p1933_p10 = scmp.ne.s32.totalorder %s263_s11, %s1932_s13  ;;  %p1941_p9 = scmp.lt.s32.totalorder %s1932_s13, %s1932_s13 }
  0x33   : > { %p1935_p11 = pnand %p1933_p10, %p2317_p3  ;;  %p1942_p8 = por %p1941_p9, %p1940_p12 }
  0x35   : > { %p1936_p0 = pneg %p1935_p11 }
  0x37   : > { %p1943_p13 = pnand %p1942_p8, %p1936_p0 }
  0x39   : > { %1946 = shalt.err (!%p1943_p13)
}
  0x3a   : > { %s2172_s15 = smov 192   ;;  %s2173_s16 = smov 12  }
  0x3b   : > { %1746 = dma.hbm_to_vmem [thread:$0]  (!%p2305_p1), %s2610_s2, 3072, %s263_s11, [#allocation9], %s2172_s15, %s2172_s15, %s2173_s16  }
  0x3c   : > { %s2174_s23 = smov [#allocation5]   ;;  %s1947_s21 = scalar_lea.hbm %s2612_s4, 2048 }
  0x3d   : > { %s249_s26 = sshll.u32 %s2174_s23, 4  ;;  %p1948_p8 = scmp.ne.s32.totalorder %s2612_s4, %s1947_s21  ;;  %s250_s26 = int_to_ptr.vmem [resolvable:$true] %s249_s26 }
  0x3e   : > { %p1954_p13 = scmp.lt.u32.totalorder %s1947_s21, %s2612_s4 }
  0x3f   : > { %p1950_p9 = pnand %p1948_p8, %p2317_p3 }
  0x41   : > { %p1951_p12 = pneg %p1950_p9 }
  0x43   : > { %p1956_p2 = pnand %p1954_p13, %p1951_p12 }
  0x45   : > { %1959 = shalt.err (!%p1956_p2)
}
  0x46   : > { %s1960_s11 = scalar_lea.vmem %s289_s14, 2048  ;;  %p1968_p7 = scmp.lt.s32.totalorder %s289_s14, %s289_s14 }
  0x47   : > { %p1961_p4 = scmp.ne.s32.totalorder %s289_s14, %s1960_s11  ;;  %p1969_p10 = scmp.lt.s32.totalorder %s1960_s11, %s1960_s11 }
  0x49   : > { %p1963_p5 = pnand %p1961_p4, %p2317_p3  ;;  %p1970_p11 = por %p1969_p10, %p1968_p7 }
  0x4b   : > { %p1964_p6 = pneg %p1963_p5 }
  0x4d   : > { %p1971_p0 = pnand %p1970_p11, %p1964_p6 }
  0x4f   : > { %1974 = shalt.err (!%p1971_p0)
}
  0x50   : > { %s2175_s24 = smov 128   ;;  %s2176_s27 = smov 8  }
  0x51   : > { %1752 = dma.hbm_to_vmem [thread:$0]  (!%p2305_p1), %s2612_s4, 2048, %s289_s14, [#allocation12], %s2175_s24, %s2175_s24, %s2176_s27  }
  0x52   : > { %s1975_s16 = scalar_lea.hbm %s2609_s1, 8192 }
  0x53   : > { %p1976_p8 = scmp.ne.s32.totalorder %s2609_s1, %s1975_s16  ;;  %p1982_p13 = scmp.lt.u32.totalorder %s1975_s16, %s2609_s1 }
  0x55   : > { %p1978_p9 = pnand %p1976_p8, %p2317_p3 }
  0x57   : > { %p1979_p12 = pneg %p1978_p9 }
  0x59   : > { %p1984_p2 = pnand %p1982_p13, %p1979_p12 }
  0x5b   : > { %1987 = shalt.err (!%p1984_p2)
}
  0x5c   : > { %s1988_s13 = scalar_lea.vmem %s250_s26, 8192  ;;  %p1996_p7 = scmp.lt.s32.totalorder %s250_s26, %s250_s26 }
  0x5d   : > { %p1989_p4 = scmp.ne.s32.totalorder %s250_s26, %s1988_s13  ;;  %p1997_p10 = scmp.lt.s32.totalorder %s1988_s13, %s1988_s13 }
  0x5f   : > { %p1991_p5 = pnand %p1989_p4, %p2317_p3  ;;  %p1998_p11 = por %p1997_p10, %p1996_p7 }
  0x61   : > { %p1992_p6 = pneg %p1991_p5 }
  0x63   : > { %p1999_p0 = pnand %p1998_p11, %p1992_p6 }
  0x65   : > { %2002 = shalt.err (!%p1999_p0)
}
  0x66   : > { %1743 = dma.hbm_to_vmem [thread:$0]  (!%p2305_p1), %s2609_s1, 8192, %s250_s26, [#allocation6], %s2175_s24, %s2175_s24, %s2176_s27  }
  0x67   : > { %s2177_s19 = smov [#allocation10]   ;;  %s2003_s16 = scalar_lea.hbm %s2611_s3, 1024 }
  0x68   : > { %s275_s21 = sshll.u32 %s2177_s19, 4  ;;  %p2004_p8 = scmp.ne.s32.totalorder %s2611_s3, %s2003_s16  ;;  %s276_s21 = int_to_ptr.vmem [resolvable:$true] %s275_s21 }
  0x69   : > { %p2010_p13 = scmp.lt.u32.totalorder %s2003_s16, %s2611_s3 }
  0x6a   : > { %p2006_p9 = pnand %p2004_p8, %p2317_p3 }
  0x6c   : > { %p2007_p12 = pneg %p2006_p9 }
  0x6e   : > { %p2012_p2 = pnand %p2010_p13, %p2007_p12 }
  0x70   : > { %2015 = shalt.err (!%p2012_p2)
}
  0x71   : > { %s2016_s26 = scalar_lea.vmem %s276_s21, 1024  ;;  %p2024_p7 = scmp.lt.s32.totalorder %s276_s21, %s276_s21 }
  0x72   : > { %p2017_p4 = scmp.ne.s32.totalorder %s276_s21, %s2016_s26  ;;  %p2025_p10 = scmp.lt.s32.totalorder %s2016_s26, %s2016_s26 }
  0x74   : > { %p2019_p5 = pnand %p2017_p4, %p2317_p3  ;;  %p2026_p11 = por %p2025_p10, %p2024_p7 }
  0x76   : > { %p2020_p6 = pneg %p2019_p5 }
  0x78   : > { %p2027_p0 = pnand %p2026_p11, %p2020_p6 }
  0x7a   : > { %2030 = shalt.err (!%p2027_p0)
}
  0x7b   : > { %s2178_s24 = smov 64   ;;  %s2179_s27 = smov 4  }
  0x7c   : > { %1749 = dma.hbm_to_vmem [thread:$0]  (!%p2305_p1), %s2611_s3, 1024, %s276_s21, [#allocation9], %s2178_s24, %s2178_s24, %s2179_s27  }
  0x7d   : > { %s2180_s11 = smov [#allocation13]   ;;  %s2031_s16 = scalar_lea.hbm %s2613_s5, 2048 }
  0x7e   : > { %s301_s19 = sshll.u32 %s2180_s11, 4  ;;  %p2032_p8 = scmp.ne.s32.totalorder %s2613_s5, %s2031_s16  ;;  %s302_s19 = int_to_ptr.vmem [resolvable:$true] %s301_s19 }
  0x7f   : > { %p2038_p13 = scmp.lt.u32.totalorder %s2031_s16, %s2613_s5 }
  0x80   : > { %p2034_p9 = pnand %p2032_p8, %p2317_p3 }
  0x82   : > { %p2035_p12 = pneg %p2034_p9 }
  0x84   : > { %p2040_p2 = pnand %p2038_p13, %p2035_p12 }
  0x86   : > { %2043 = shalt.err (!%p2040_p2)
}
  0x87   : > { %s2044_s21 = scalar_lea.vmem %s302_s19, 2048  ;;  %p2052_p7 = scmp.lt.s32.totalorder %s302_s19, %s302_s19 }
  0x88   : > { %p2045_p4 = scmp.ne.s32.totalorder %s302_s19, %s2044_s21  ;;  %p2053_p10 = scmp.lt.s32.totalorder %s2044_s21, %s2044_s21 }
  0x8a   : > { %p2047_p5 = pnand %p2045_p4, %p2317_p3  ;;  %p2054_p11 = por %p2053_p10, %p2052_p7 }
  0x8c   : > { %p2048_p6 = pneg %p2047_p5 }
  0x8e   : > { %p2055_p0 = pnand %p2054_p11, %p2048_p6 }
  0x90   : > { %2058 = shalt.err (!%p2055_p0)
}
  0x91   : > { %1755 = dma.hbm_to_vmem [thread:$0]  (!%p2305_p1), %s2613_s5, 2048, %s302_s19, [#allocation12], %s2178_s24, %s2178_s24, %s2179_s27  }
  0x92   : > { %p2636_p8 = scmp.ne.s32.totalorder %s2633_s30, 0 }
  0x93   : > { %p2637_p9 = scmp.eq.s32.totalorder (!%p2636_p8), %s2269_s0, 0 }
  0x94   : > { %323 = sbr.rel (%p2636_p8) target bundleno = 2467 (0x9a3), region = 48 }
  0x9b   : > { %2134 = dma.done.wait (%p2637_p9), [#allocation6], 8192   ;;  %p2638_p3 = pmov %p2637_p9 }
  0x9d   : > { %2136 = vsyncadd (%p2638_p3), [#allocation6], 4294959104  ;;  %p2639_p12 = pmov %p2638_p3 }
  0x9e   : > { %p2640_p13 = pmov %p2638_p3 }
  0x9f   : > { %2138 = dma.done.wait (%p2639_p12), [#allocation9], 4096  }
  0xa0   : > { %2140 = vsyncadd (%p2640_p13), [#allocation9], 4294963200  ;;  %p2641_p2 = pmov %p2638_p3 }
  0xa2   : > { %2142 = dma.done.wait (%p2641_p2), [#allocation12], 4096   ;;  %p2642_p1 = pmov %p2641_p2 }
  0xa3   : > { %s2420_s30 = sshll.u32 %s2269_s0, 3  ;;  %v2181_v0 = vmov 0   ;;  %v2182_v1 = vmov 0.0   ;;  %v1821_v2 = vld [vmem:[#allocation8 + $0x4] ss:$12 sps:$4 sm:$0xff]   ;;  %vm2183_vm0 = vmmov 0  }
  0xa4   : > { %2144 = vsyncadd (%p2642_p1), [#allocation12], 4294963200  ;;  %650 = vmatprep.mubr.bf16.mxu0 %v2181_v0  ;;  %s384_s12 = sld [smem:[#allocation4 + %s2420_s30]]  ;;  %s392_s25 = sadd.s32 1, %s2420_s30  ;;  %1664 = vmatprep.subr.bf16.mxu1 %v2182_v1  ;;  %v1823_v3 = vld [vmem:[#allocation8] ss:$12 sps:$4 sm:$0xff]  }
  0xa5   : > { %s393_s24 = sld [smem:[#allocation4 + %s392_s25]]  ;;  %s401_s27 = sadd.s32 2, %s2420_s30  ;;  %618 = vmatprep.subr.bf16.mxu0 %v1821_v2  ;;  %v1824_v4 = vld [vmem:[#allocation8 + $0x1c] ss:$12 sps:$4 sm:$0xff]   ;;  %v1826_v5 = vld [vmem:[#allocation8 + $0x18] ss:$12 sps:$4 sm:$0xff]   ;;  %1680 = vmatprep.mubr.msk.bf16.mxu1 %vm2183_vm0, %v2182_v1 }
  0xa6   : > { %s410_s14 = sadd.s32 3, %s2420_s30  ;;  %s2428_s11 = sld [smem:[#allocation4 + %s401_s27]]  ;;  %619 = vmatpush1.bf16.msra.mxu0 %v1823_v3  ;;  %v1827_v6 = vld [vmem:[#allocation8 + $0x34] ss:$12 sps:$4 sm:$0xff]   ;;  %v1829_v7 = vld [vmem:[#allocation8 + $0x30] ss:$12 sps:$4 sm:$0xff]  }
  0xa7   : > { %s2430_s19 = sld [smem:[#allocation4 + %s410_s14]]  ;;  %s419_s29 = sadd.s32 4, %s2420_s30  ;;  %620 = vmatprep.subr.bf16.mxu0 %v1824_v4  ;;  %v1830_v8 = vld [vmem:[#allocation8 + $0x4c] ss:$12 sps:$4 sm:$0xff]   ;;  %v1832_v9 = vld [vmem:[#allocation8 + $0x48] ss:$12 sps:$4 sm:$0xff]  }
  0xa8   : > { %s428_s15 = sadd.s32 5, %s2420_s30  ;;  %s2434_s16 = sld [smem:[#allocation4 + %s419_s29]]  ;;  %v1833_v10 = vld [vmem:[#allocation8 + $0x64] ss:$12 sps:$4 sm:$0xff]   ;;  %v1845_v13 = vld [vmem:[#allocation8 + $0x8] ss:$12 sps:$4 sm:$0xff]  }
  0xa9   : > { %s2436_s18 = sld [smem:[#allocation4 + %s428_s15]]  ;;  %s437_s23 = sadd.s32 6, %s2420_s30  ;;  %v1835_v14 = vld [vmem:[#allocation8 + $0x60] ss:$12 sps:$4 sm:$0xff]   ;;  %1665 = vmatpush3.bf16.msra.mxu1 %v1845_v13  ;;  %v1836_v16 = vld [vmem:[#allocation8 + $0x7c] ss:$12 sps:$4 sm:$0xff]  }
  0xaa   : > { %p385_p4 = scmp.gt.s32.totalorder %s384_s12, 0  ;;  %p1484_p5 = scmp.lt.s32.totalorder %s384_s12, 511  ;;  %621 = vmatpush1.bf16.msra.mxu0 %v1826_v5  ;;  %v1846_v15 = vld [vmem:[#allocation8 + $0x20] ss:$12 sps:$4 sm:$0xff]   ;;  %1666 = vmatprep.subr.bf16.mxu1 %v2182_v1  ;;  %v1838_v18 = vld [vmem:[#allocation8 + $0x78] ss:$12 sps:$4 sm:$0xff]  }
  0xab   : > { %p394_p6 = scmp.gt.s32.totalorder %s393_s24, 0  ;;  %p1489_p7 = scmp.lt.s32.totalorder %s393_s24, 511  ;;  %622 = vmatprep.subr.bf16.mxu0 %v1827_v6  ;;  %v1847_v20 = vld [vmem:[#allocation8 + $0x38] ss:$12 sps:$4 sm:$0xff]   ;;  %v1839_v21 = vld [vmem:[#allocation8 + $0x94] ss:$12 sps:$4 sm:$0xff]  }
  0xac   : > { %s2653_s12 = smov (!%p385_p4, %s384_s12), 0  ;;  %p403_p10 = scmp.gt.s32.totalorder %s2428_s11, 0  ;;  %v1848_v22 = vld [vmem:[#allocation8 + $0x50] ss:$12 sps:$4 sm:$0xff]   ;;  %v1842_v25 = vld [vmem:[#allocation8 + $0xac] ss:$12 sps:$4 sm:$0xff]  }
  0xad   : > { %s2655_s24 = smov (!%p394_p6, %s393_s24), 0  ;;  %s2657_s12 = smov (!%p1484_p5, %s2653_s12), 511  ;;  %1667 = vmatpush3.bf16.msra.mxu1 %v1846_v15  ;;  %v1841_v24 = vld [vmem:[#allocation8 + $0x90] ss:$12 sps:$4 sm:$0xff]   ;;  %v1844_v26 = vld [vmem:[#allocation8 + $0xa8] ss:$12 sps:$4 sm:$0xff]  }
  0xae   : > { %s2659_s24 = smov (!%p1489_p7, %s2655_s24), 511  ;;  %p1494_p11 = scmp.lt.s32.totalorder %s2428_s11, 511  ;;  %623 = vmatpush1.bf16.msra.mxu0 %v1829_v7  ;;  %1668 = vmatprep.subr.bf16.mxu1 %v2182_v1  ;;  %v1849_v28 = vld [vmem:[#allocation8 + $0x68] ss:$12 sps:$4 sm:$0xff]   ;;  %v1850_v29 = vld [vmem:[#allocation8 + $0x80] ss:$12 sps:$4 sm:$0xff]  }
  0xaf   : > { %p412_p0 = scmp.gt.s32.totalorder %s2430_s19, 0  ;;  %s389_s17 = scalar_lea.vmem [#allocation5], %s2657_s12  ;;  %624 = vmatprep.subr.bf16.mxu0 %v1830_v8  ;;  %v1851_v30 = vld [vmem:[#allocation8 + $0x98] ss:$12 sps:$4 sm:$0xff]   ;;  %v1852_v32 = vld [vmem:[#allocation8 + $0xb0] ss:$12 sps:$4 sm:$0xff]  }
  0xb0   : > { %v390_v11 = vld [vmem:[%s389_s17] sm:$0x1]  ;;  %p1499_p8 = scmp.lt.s32.totalorder %s2430_s19, 511  ;;  %s398_s10 = scalar_lea.vmem [#allocation5], %s2659_s24  ;;  %v1549_v36 = vld [vmem:[%s2614_s6 + $0x1] ss:$0 sm:$0xff] }
  0xb1   : > { %391 = vst [vmem:[#allocation2] sm:$0x1] %v390_v11  ;;  %v399_v12 = vld [vmem:[%s398_s10] sm:$0x1]  ;;  %s404_s21 = scalar_select %p403_p10, %s2428_s11, 0  ;;  %1669 = vmatpush3.bf16.msra.mxu1 %v1847_v20  ;;  %vm774_vm1 = vcmask 1043456  }
  0xb2   : > { %400 = vst [vmem:[#allocation2 + $0x1] sm:$0x1] %v399_v12  ;;  %s2661_s19 = smov (!%p412_p0, %s2430_s19), 0  ;;  %625 = vmatpush1.bf16.msra.mxu0 %v1832_v9  ;;  %p421_p9 = scmp.gt.s32.totalorder %s2434_s16, 0  ;;  %1670 = vmatprep.subr.bf16.mxu1 %v2182_v1  ;;  %v1548_v37 = vld [vmem:[%s2614_s6] ss:$0 sm:$0xff] }
  0xb3   : > { %s2663_s21 = smov (!%p1494_p11, %s404_s21), 511  ;;  %s2665_s19 = smov (!%p1499_p8, %s2661_s19), 511  ;;  %626 = vmatprep.subr.bf16.mxu0 %v1833_v10  ;;  %v1550_v47 = vld [vmem:[%s2614_s6 + $0x2] ss:$0 sm:$0xff]  ;;  %vm757_vm2 = vcmask 64512   ;;  %v1854_v4 = vld [vmem:[#allocation10 + $0x8] sm:$0xff]  }
  0xb4   : > { %s407_s26 = scalar_lea.vmem [#allocation5], %s2663_s21  ;;  %p1504_p3 = scmp.lt.s32.totalorder %s2434_s16, 511  ;;  %v1853_v3 = vld [vmem:[#allocation10] sm:$0xff]   ;;  %v1855_v5 = vld [vmem:[#allocation10 + $0x10] sm:$0xff]   ;;  %v1856_v6 = vld [vmem:[#allocation10 + $0x18] sm:$0xff]  }
  0xb5   : > { %v408_v17 = vld [vmem:[%s407_s26] sm:$0x1]  ;;  %s416_s13 = scalar_lea.vmem [#allocation5], %s2665_s19  ;;  %s2667_s16 = smov (!%p421_p9, %s2434_s16), 0  ;;  %1671 = vmatpush3.bf16.msra.mxu1 %v1848_v22  ;;  %v1858_v8 = vld [vmem:[#allocation10 + $0x28] sm:$0xff]   ;;  %v1859_v9 = vld [vmem:[#allocation10 + $0x30] sm:$0xff]  }
  0xb6   : > { %409 = vst [vmem:[#allocation2 + $0x2] sm:$0x1] %v408_v17  ;;  %v417_v19 = vld [vmem:[%s416_s13] sm:$0x1]  ;;  %p430_p12 = scmp.gt.s32.totalorder %s2436_s18, 0  ;;  %p1509_p13 = scmp.lt.s32.totalorder %s2436_s18, 511  ;;  %627 = vmatpush1.bf16.msra.mxu0 %v1835_v14  ;;  %1672 = vmatprep.subr.bf16.mxu1 %v2182_v1 }
  0xb7   : > { %418 = vst [vmem:[#allocation2 + $0x3] sm:$0x1] %v417_v19  ;;  %s2669_s16 = smov (!%p1504_p3, %s2667_s16), 511  ;;  %628 = vmatprep.subr.bf16.mxu0 %v1836_v16  ;;  %s2457_s12 = sld [smem:[#allocation4 + %s437_s23]]  ;;  %v1857_v7 = vld [vmem:[#allocation10 + $0x20] sm:$0xff]   ;;  %v1860_v14 = vld [vmem:[#allocation10 + $0x38] sm:$0xff]  }
  0xb8   : > { %s2671_s18 = smov (!%p430_p12, %s2436_s18), 0  ;;  %s425_s25 = scalar_lea.vmem [#allocation5], %s2669_s16 }
  0xb9   : > { %v426_v23 = vld [vmem:[%s425_s25] sm:$0x1]  ;;  %s2673_s18 = smov (!%p1509_p13, %s2671_s18), 511  ;;  %s446_s24 = sadd.s32 7, %s2420_s30  ;;  %1673 = vmatpush3.bf16.msra.mxu1 %v1849_v28  ;;  %v1864_v28 = vld [vmem:[#allocation11 + $0x10] ss:$8 sps:$4 sm:$0xff]  }
  0xba   : > { %629 = vmatpush1.bf16.msra.mxu0 %v1838_v18  ;;  %427 = vst [vmem:[#allocation2 + $0x4] sm:$0x1] %v426_v23  ;;  %s447_s27 = sld [smem:[#allocation4 + %s446_s24]]  ;;  %s434_s14 = scalar_lea.vmem [#allocation5], %s2673_s18  ;;  %1674 = vmatprep.subr.bf16.mxu1 %v2182_v1 }
  0xbb   : > { %630 = vmatprep.subr.bf16.mxu0 %v1839_v21  ;;  %v435_v27 = vld [vmem:[%s434_s14] sm:$0x1]  ;;  %p2643_p7 = scmp.ne.s32.totalorder %s2630_s28, 0  ;;  %s2184_s21 = smov [#allocation14]  }
  0xbc   : > { %436 = vst [vmem:[#allocation2 + $0x5] sm:$0x1] %v435_v27  ;;  %v1866_v27 = vld [vmem:[#allocation11 + $0x14] ss:$8 sps:$4 sm:$0xff]   ;;  %s2063_s26 = sshll.u32 %s2184_s21, 4  ;;  %s2064_s26 = int_to_ptr.vmem [resolvable:$false] %s2063_s26 }
  0xbd   : > { %p439_p2 = scmp.gt.s32.totalorder %s2457_s12, 0  ;;  %p1514_p1 = scmp.lt.s32.totalorder %s2457_s12, 511  ;;  %1675 = vmatpush3.bf16.msra.mxu1 %v1850_v29  ;;  %v1869_v29 = vld [vmem:[#allocation11 + $0x24] ss:$8 sps:$4 sm:$0xff]  }
  0xbe   : > { %631 = vmatpush1.bf16.msra.mxu0 %v1841_v24  ;;  %1676 = vmatprep.subr.bf16.mxu1 %v2182_v1  ;;  %s2065_s13 = scalar_lea.vmem %s2064_s26, 256 }
  0xbf   : > { %632 = vmatprep.subr.bf16.mxu0 %v1842_v25  ;;  %s2675_s12 = smov (!%p439_p2, %s2457_s12), 0 }
  0xc0   : > { %p448_p4 = scmp.gt.s32.totalorder %s447_s27, 0  ;;  %p1519_p5 = scmp.lt.s32.totalorder %s447_s27, 511 }
  0xc1   : > { %s2677_s12 = smov (!%p1514_p1, %s2675_s12), 511  ;;  %1677 = vmatpush3.bf16.msra.mxu1 %v1851_v30  ;;  %v1867_v30 = vld [vmem:[#allocation11 + $0x20] ss:$8 sps:$4 sm:$0xff]  }
  0xc2   : > { %633 = vmatpush1.bf16.msra.mxu0 %v1844_v26  ;;  %s2679_s27 = smov (!%p448_p4, %s447_s27), 0  ;;  %s443_s30 = scalar_lea.vmem [#allocation5], %s2677_s12  ;;  %1678 = vmatprep.subr.bf16.mxu1 %v2182_v1  ;;  %v1863_v26 = vld [vmem:[#allocation11 + $0x4] ss:$8 sps:$4 sm:$0xff]  }
  0xc3   : > { %1696 = vmatprep.subr.bf16.mxu0 %v2182_v1  ;;  %v444_v31 = vld [vmem:[%s443_s30] sm:$0x1]  ;;  %s2681_s27 = smov (!%p1519_p5, %s2679_s27), 511  ;;  %s2520_s30 = sand.u32 1, %s2159_s20  }
  0xc4   : > { %445 = vst [vmem:[#allocation2 + $0x6] sm:$0x1] %v444_v31  ;;  %s452_s11 = scalar_lea.vmem [#allocation5], %s2681_s27  ;;  %s1481_s19 = sshll.u32 %s2520_s30, 3 }
  0xc5   : > { %v453_v33 = vld [vmem:[%s452_s11] sm:$0x1]  ;;  %1679 = vmatpush3.bf16.msra.mxu1 %v1852_v32  ;;  %s1600_s11 = sshll.u32 %s2269_s0, 7  ;;  %s365_s18 = scalar_lea.vmem [#allocation14], %s1481_s19 }
  0xc6   : > { %454 = vst [vmem:[#allocation2 + $0x7] sm:$0x1] %v453_v33  ;;  %1684 = vmatprep.subr.bf16.mxu1 %v2182_v1  ;;  %s2529_s16 = scalar_lea.hbm %s2616_s8, %s1600_s11  ;;  %s1318_s17 = sshll.u32 %s365_s18, 4  ;;  %s1319_s17 = int_to_ptr.vmem [resolvable:$true] %s1318_s17 }
  0xc7   : > { %s1300_s23 = scalar_lea.sflag [#allocation7], %s2520_s30  ;;  %s2059_s10 = scalar_lea.vmem %s1319_s17, 128 }
  0xc8   : > { %p2060_p6 = scmp.ne.s32.totalorder %s1319_s17, %s2059_s10  ;;  %p2066_p0 = scmp.lt.s32.totalorder %s1319_s17, %s2064_s26 }
  0xc9   : > { %p2067_p8 = scmp.lt.s32.totalorder %s2065_s13, %s2059_s10 }
  0xca   : > { %p2061_p10 = pnand %p2060_p6, %p2643_p7 }
  0xcb   : > { %p2068_p9 = por %p2067_p8, %p2066_p0 }
  0xcc   : > { %p2062_p11 = pneg %p2061_p10 }
  0xcd   : > { %v2470_v34 = vld [vmem:[#allocation2] sm:$0xff] }
  0xce   : > { %v457_v35 = vpack.c.bf16 %v2470_v34, %v2470_v34  ;;  %456 = vst [vmem:[%s365_s18] sm:$0xff] %v2470_v34  ;;  %p2069_p3 = pnand %p2068_p9, %p2062_p11 }
  0xd0   : > { %651 = vmatmul.mubr.bf16.vlgmr.msra.gmra.mrb[0].mxu0 %v457_v35  ;;  %1681 = vmatmul.mubr.bf16.vlgmr.msra.gmra.mrb[0].mxu1 %v457_v35 }
  0xd1   : > { %1712 = vmatprep.mubr.msk.bf16.mxu0 %vm2183_vm0, %v2182_v1  ;;  %1686 = vmatprep.mubr.msk.bf16.mxu1 %vm2183_vm0, %v2182_v1 }
  0xd2   : > { %1697 = vmatpush3.bf16.msra.mxu0 %v1853_v3 }
  0xd3   : > { %1698 = vmatprep.subr.bf16.mxu0 %v2182_v1 }
  0xd6   : > { %1699 = vmatpush3.bf16.msra.mxu0 %v1854_v4 }
  0xd7   : > { %1700 = vmatprep.subr.bf16.mxu0 %v2182_v1 }
  0xda   : > { %1701 = vmatpush3.bf16.msra.mxu0 %v1855_v5 }
  0xdb   : > { %1702 = vmatprep.subr.bf16.mxu0 %v2182_v1 }
  0xde   : > { %1703 = vmatpush3.bf16.msra.mxu0 %v1856_v6  ;;  %v1897_v6 = vld [vmem:[#allocation13 + $0x70] sm:$0xff]  }
  0xdf   : > { %1704 = vmatprep.subr.bf16.mxu0 %v2182_v1 }
  0xe2   : > { %1705 = vmatpush3.bf16.msra.mxu0 %v1857_v7  ;;  %v1898_v7 = vld [vmem:[#allocation13 + $0x30] sm:$0xff]  }
  0xe3   : > { %1706 = vmatprep.subr.bf16.mxu0 %v2182_v1 }
  0xe6   : > { %1707 = vmatpush3.bf16.msra.mxu0 %v1858_v8  ;;  %v1899_v8 = vld [vmem:[#allocation13 + $0x78] sm:$0xff]  }
  0xe7   : > { %1708 = vmatprep.subr.bf16.mxu0 %v2182_v1 }
  0xea   : > { %1709 = vmatpush3.bf16.msra.mxu0 %v1859_v9  ;;  %v1900_v9 = vld [vmem:[#allocation13 + $0x38] sm:$0xff]  }
  0xeb   : > { %1710 = vmatprep.subr.bf16.mxu0 %v2182_v1 }
  0xee   : > { %1711 = vmatpush3.bf16.msra.mxu0 %v1860_v14 }
 0x1a3   : > { %v652_v38 = vpop.f32.mrb[0].mxu0  ;;  %v693_v48 = vpop.f32.mrb[0].mxu1 }
 0x1a4   : > { %v654_v39 = vpop.f32.mrb[1].mxu0  ;;  %v703_v42 = vadd.f32 %v1548_v37, %v652_v38  ;;  %v714_v49 = vadd.f32 %v1550_v47, %v693_v48  ;;  %v1682_v50 = vpop.f32.mrb[1].mxu1  ;;  %v1870_v37 = vld [vmem:[#allocation11 + $0x30] ss:$8 sps:$4 sm:$0xff]   ;;  %v1875_v38 = vld [vmem:[#allocation11 + $0x44] ss:$8 sps:$4 sm:$0xff]  }
 0x1a5   : > { %v709_v40 = vadd.f32 %v1549_v36, %v654_v39  ;;  %v656_v41 = vpop.f32.mrb[2].mxu0  ;;  %v696_v51 = vpop.f32.mrb[2].mxu1  ;;  %v1872_v36 = vld [vmem:[#allocation11 + $0x34] ss:$8 sps:$4 sm:$0xff]   ;;  %v1873_v39 = vld [vmem:[#allocation11 + $0x40] ss:$8 sps:$4 sm:$0xff]  }
 0x1a6   : > { %v657_v43 = vpop.f32.mrb[3].mxu0  ;;  %v704_v45 = vmul.f32 0.088388346, %v703_v42  ;;  %v770_v52 = vpack.c.bf16 %v714_v49, %v714_v49  ;;  %v1683_v53 = vpop.f32.mrb[3].mxu1  ;;  %v1876_v41 = vld [vmem:[#allocation11 + $0x50] ss:$8 sps:$4 sm:$0xff]  }
 0x1a7   : > { %v716_v44 = vpack.c.bf16 %v709_v40, %v709_v40  ;;  %v1878_v40 = vld [vmem:[#allocation11 + $0x54] ss:$8 sps:$4 sm:$0xff]   ;;  %v1881_v42 = vld [vmem:[#allocation11 + $0x64] ss:$8 sps:$4 sm:$0xff]   ;;  %v1879_v43 = vld [vmem:[#allocation11 + $0x60] ss:$8 sps:$4 sm:$0xff]  }
 0x1a8   : > { %v715_v46 = vpack.c.bf16 %v704_v45, %v704_v45  ;;  %v776_v54 = vsel %vm774_vm1, %v770_v52, 0  ;;  %v1882_v45 = vld [vmem:[#allocation11 + $0x70] ss:$8 sps:$4 sm:$0xff]   ;;  %v1886_v47 = vld [vmem:[#allocation13] sm:$0xff]   ;;  %v1887_v48 = vld [vmem:[#allocation13 + $0x48] sm:$0xff]  }
 0x1a9   : > { %1685 = vmatpush3.bf16.xpose.msra.mxu1 %v716_v44  ;;  %v1884_v44 = vld [vmem:[#allocation11 + $0x74] ss:$8 sps:$4 sm:$0xff]   ;;  %v1888_v49 = vld [vmem:[#allocation13 + $0x8] sm:$0xff]  }
 0x1aa   : > { %1690 = vmatprep.subr.bf16.mxu1 %v2182_v1  ;;  %v1889_v50 = vld [vmem:[#allocation13 + $0x50] sm:$0xff]   ;;  %v1891_v52 = vld [vmem:[#allocation13 + $0x58] sm:$0xff]  }
 0x1ab   : > { %v1890_v51 = vld [vmem:[#allocation13 + $0x10] sm:$0xff]   ;;  %v1892_v53 = vld [vmem:[#allocation13 + $0x18] sm:$0xff]  }
 0x1b0   : > { %1687 = vmatmul.mubr.bf16.vlgmr.msra.gmra.mrb[4].mxu1 %v715_v46  ;;  %v1885_v46 = vld [vmem:[#allocation13 + $0x40] sm:$0xff]  }
 0x1b1   : > { %1692 = vmatprep.mubr.msk.bf16.mxu1 %vm2183_vm0, %v2182_v1  ;;  %1691 = vmatpush3.bf16.msra.mxu1 %v776_v54  ;;  %v1552_v1 = vld [vmem:[%s2614_s6 + $0x3] ss:$0 sm:$0xff] }
 0x1b2   : > { %1059 = vmatprep.subr.bf16.mxu1 %v1863_v26  ;;  %1642 = vmatprep.subr.bf16.mxu0 %v1885_v46  ;;  %v1893_v54 = vld [vmem:[#allocation13 + $0x60] sm:$0xff]  }
 0x1b3   : > { %v1579_v26 = vld [vmem:[%s2614_s6 + $0x4] ss:$0 sm:$0xff] }
 0x283   : > { %v751_v55 = vpop.f32.mrb[4].mxu1 }
 0x284   : > { %v1688_v56 = vpop.f32.mrb[5].mxu1  ;;  %v758_v57 = vsel %vm757_vm2, %v751_v55, -inf }
 0x285   : > { %759 = vmax.xlane.f32.xlu0 %v758_v57  ;;  %v754_v58 = vpop.f32.mrb[6].mxu1  ;;  %v1895_v56 = vld [vmem:[#allocation13 + $0x68] sm:$0xff]  }
 0x286   : > { %v1689_v59 = vpop.f32.mrb[7].mxu1  ;;  %v1896_v57 = vld [vmem:[#allocation13 + $0x28] sm:$0xff]  }
 0x312   : > { %v760_v60 = vpop.xlane.xlu0 %759 }
 0x313   : > { %v761_v61 = vsub.f32 %v751_v55, %v760_v60  ;;  %v1894_v55 = vld [vmem:[#allocation13 + $0x20] sm:$0xff]  }
 0x315   : > { %v762_v62 = vmul.f32 1.442695, %v761_v61 }
 0x317   : > { %1901 = vpow2.f32 %v762_v62  ;;  %v1561_v62 = vld [vmem:[%s2614_s6 + $0x5] ss:$0 sm:$0xff] }
 0x321   : > { %v1902_v63 = vpop.eup %1901 }
 0x322   : > { %v764_v2 = vsel %vm757_vm2, %v1902_v63, 0.0 }
 0x323   : > { %765 = vadd.xlane.f32.xlu0 %v764_v2  ;;  %v1562_v2 = vld [vmem:[%s2614_s6 + $0x6] ss:$0 sm:$0xff] }
 0x3b0   : > { %v766_v10 = vpop.xlane.xlu0 %765 }
 0x3b1   : > { %1903 = vrcp.f32 %v766_v10  ;;  %v969_v10 = vlaneseq }
 0x3bb   : > { %v1904_v11 = vpop.eup %1903 }
 0x3bc   : > { %v768_v12 = vmul.f32 %v1904_v11, %v1902_v63  ;;  %v970_v11 = vshrl.u32 %v969_v10, 7 }
 0x3be   : > { %v769_v13 = vpack.c.bf16 %v768_v12, %v768_v12  ;;  %v971_v12 = vsub.s32 0, %v970_v11  ;;  %v975_v14 = vsub.s32 1, %v970_v11 }
 0x3c0   : > { %1693 = vmatmul.mubr.msk.bf16.vlgmr.msra.gmra.mrb[8].mxu1 %vm757_vm2, %v769_v13  ;;  %v967_v13 = vld [vmem:[%s2615_s7] sm:$0x3] }
 0x3c1   : > { %1091 = vmatprep.mubr.bf16.mxu1 %v2181_v0  ;;  %v1861_v0 = vld [vmem:[#allocation11] ss:$8 sps:$4 sm:$0xff]  }
 0x3c2   : > { %1060 = vmatpush1.bf16.msra.mxu1 %v1861_v0 }
 0x3c3   : > { %1061 = vmatprep.subr.bf16.mxu1 %v1866_v27 }
 0x3c6   : > { %1062 = vmatpush1.bf16.msra.mxu1 %v1864_v28 }
 0x3c7   : > { %1063 = vmatprep.subr.bf16.mxu1 %v1869_v29 }
 0x3ca   : > { %1064 = vmatpush1.bf16.msra.mxu1 %v1867_v30 }
 0x3cb   : > { %1065 = vmatprep.subr.bf16.mxu1 %v1872_v36 }
 0x3ce   : > { %1066 = vmatpush1.bf16.msra.mxu1 %v1870_v37 }
 0x3cf   : > { %1067 = vmatprep.subr.bf16.mxu1 %v1875_v38 }
 0x3d2   : > { %1068 = vmatpush1.bf16.msra.mxu1 %v1873_v39 }
 0x3d3   : > { %1069 = vmatprep.subr.bf16.mxu1 %v1878_v40 }
 0x3d6   : > { %1070 = vmatpush1.bf16.msra.mxu1 %v1876_v41 }
 0x3d7   : > { %1071 = vmatprep.subr.bf16.mxu1 %v1881_v42 }
 0x3da   : > { %1072 = vmatpush1.bf16.msra.mxu1 %v1879_v43 }
 0x3db   : > { %1073 = vmatprep.subr.bf16.mxu1 %v1884_v44 }
 0x3de   : > { %1074 = vmatpush1.bf16.msra.mxu1 %v1882_v45 }
 0x493   : > { %v812_v15 = vpop.f32.mrb[8].mxu1 }
 0x494   : > { %v818_v16 = vpack.c.bf16 %v812_v15, %v812_v15  ;;  %v1694_v17 = vpop.f32.mrb[9].mxu1  ;;  %v972_v15 = vrot.slane %v967_v13, %v971_v12 }
 0x495   : > { %v815_v18 = vpop.f32.mrb[10].mxu1 }
 0x496   : > { %v1695_v19 = vpop.f32.mrb[11].mxu1  ;;  %1713 = vmatmul.mubr.bf16.vlgmr.msra.gmra.mrb[4].mxu0 %v818_v16  ;;  %v976_v16 = vrot.slane %v967_v13, %v975_v14 }
 0x497   : > { %1643 = vmatpush3.bf16.msra.mxu0 %v1886_v47 }
 0x498   : > { %1644 = vmatprep.subr.bf16.mxu0 %v1887_v48 }
 0x49b   : > { %1645 = vmatpush3.bf16.msra.mxu0 %v1888_v49 }
 0x49c   : > { %1646 = vmatprep.subr.bf16.mxu0 %v1889_v50 }
 0x49f   : > { %1647 = vmatpush3.bf16.msra.mxu0 %v1890_v51 }
 0x4a0   : > { %1648 = vmatprep.subr.bf16.mxu0 %v1891_v52 }
 0x4a3   : > { %1649 = vmatpush3.bf16.msra.mxu0 %v1892_v53 }
 0x4a4   : > { %1650 = vmatprep.subr.bf16.mxu0 %v1893_v54 }
 0x4a7   : > { %1651 = vmatpush3.bf16.msra.mxu0 %v1894_v55 }
 0x4a8   : > { %1652 = vmatprep.subr.bf16.mxu0 %v1895_v56 }
 0x4ab   : > { %1653 = vmatpush3.bf16.msra.mxu0 %v1896_v57 }
 0x4ac   : > { %1654 = vmatprep.subr.bf16.mxu0 %v1897_v6 }
 0x4af   : > { %1655 = vmatpush3.bf16.msra.mxu0 %v1898_v7 }
 0x4b0   : > { %1656 = vmatprep.subr.bf16.mxu0 %v1899_v8 }
 0x4b3   : > { %1657 = vmatpush3.bf16.msra.mxu0 %v1900_v9 }
 0x569   : > { %v921_v20 = vpop.f32.mrb[4].mxu0 }
 0x56a   : > { %v922_v21 = vadd.f32 %v1552_v1, %v921_v20  ;;  %v1714_v22 = vpop.f32.mrb[5].mxu0 }
 0x56b   : > { %v924_v23 = vpop.f32.mrb[6].mxu0 }
 0x56c   : > { %v1715_v24 = vpop.f32.mrb[7].mxu0  ;;  %v927_v25 = vadd.f32 %v922_v21, %v2470_v34 }
 0x56e   : > { %928 = vadd.xlane.f32.xlu1 %v927_v25 }
 0x5fb   : > { %v929_v31 = vpop.xlane.xlu1 %928 }
 0x5fc   : > { %v931_v32 = vmul.f32 0.0078125, %v929_v31 }
 0x5fe   : > { %v932_v33 = vsub.f32 %v927_v25, %v931_v32 }
 0x600   : > { %v933_v35 = vmul.f32 %v932_v33, %v932_v33 }
 0x602   : > { %934 = vadd.xlane.f32.xlu1 %v933_v35 }
 0x68f   : > { %v935_v58 = vpop.xlane.xlu1 %934 }
 0x690   : > { %v936_v59 = vmul.f32 0.0078125, %v935_v58 }
 0x692   : > { %v937_v60 = vadd.f32 1e-05, %v936_v59 }
 0x694   : > { %1905 = vrsqrt.f32 %v937_v60 }
 0x69e   : > { %v1906_v61 = vpop.eup %1905 }
 0x69f   : > { %v939_v63 = vmul.f32 %v1906_v61, %v932_v33 }
 0x6a1   : > { %v944_v3 = vmul.f32 %v1561_v62, %v939_v63 }
 0x6a3   : > { %v949_v4 = vadd.f32 %v1562_v2, %v944_v3 }
 0x6a5   : > { %v950_v5 = vpack.c.bf16 %v949_v4, %v949_v4 }
 0x6a7   : > { %1092 = vmatmul.mubr.bf16.vlgmr.msra.gmra.mrb[12].mxu1 %v950_v5 }
 0x77a   : > { %v1093_v17 = vpop.f32.mrb[12].mxu1 }
 0x77b   : > { %v1094_v18 = vadd.f32 %v1093_v17, %v972_v15  ;;  %v1095_v19 = vpop.f32.mrb[13].mxu1 }
 0x77c   : > { %v1096_v1 = vadd.f32 %v1095_v19, %v976_v16  ;;  %v1097_v20 = vpop.f32.mrb[14].mxu1 }
 0x77d   : > { %v1100_v21 = vmax.f32 %v1094_v18, 0.0  ;;  %v1098_v22 = vpop.f32.mrb[15].mxu1 }
 0x77e   : > { %v1101_v23 = vmax.f32 %v1096_v1, 0.0 }
 0x77f   : > { %v1102_v25 = vpack.c.bf16 %v1100_v21, %v1100_v21 }
 0x780   : > { %v1103_v24 = vpack.c.bf16 %v1101_v23, %v1101_v23 }
 0x782   : > { %1268 = vmatprep.mubr.bf16.mxu0 %v1103_v24 }
 0x783   : > { %1269 = vmatmul.mubr.bf16.vlgmr.msra.gmra.mrb[8].mxu0 %v1102_v25 }
 0x856   : > { %v1658_v0 = vpop.f32.mrb[8].mxu0 }
 0x857   : > { %v1659_v27 = vpop.f32.mrb[9].mxu0 }
 0x858   : > { %v1660_v28 = vadd.f32 %v1659_v27, %v1658_v0  ;;  %v1661_v29 = vpop.f32.mrb[10].mxu0 }
 0x859   : > { %v1662_v30 = vpop.f32.mrb[11].mxu0 }
 0x85a   : > { %v1271_v31 = vadd.f32 %v1660_v28, %v1579_v26 }
 0x85c   : > { %v1276_v32 = vadd.f32 %v1271_v31, %v949_v4 }
 0x85e   : > { %1277 = vadd.xlane.f32.xlu0 %v1276_v32 }
 0x8eb   : > { %v1278_v33 = vpop.xlane.xlu0 %1277 }
 0x8ec   : > { %v1279_v35 = vmul.f32 0.0078125, %v1278_v33 }
 0x8ee   : > { %v1280_v36 = vsub.f32 %v1276_v32, %v1279_v35 }
 0x8f0   : > { %v1281_v37 = vmul.f32 %v1280_v36, %v1280_v36 }
 0x8f2   : > { %1282 = vadd.xlane.f32.xlu1 %v1281_v37 }
 0x8f3   : > { %2072 = shalt.err (!%p2069_p3)
}
 0x8f4   : > { %s2073_s12 = scalar_lea.hbm %s2529_s16, 128  ;;  %s2077_s27 = scalar_lea.hbm %s2616_s8, 256 }
 0x8f5   : > { %p2074_p12 = scmp.ne.s32.totalorder %s2529_s16, %s2073_s12  ;;  %p2078_p1 = scmp.lt.u32.totalorder %s2529_s16, %s2616_s8 }
 0x8f6   : > { %p2079_p4 = scmp.lt.u32.totalorder %s2077_s27, %s2073_s12  ;;  %p2081_p6 = scmp.lt.u32.totalorder %s2073_s12, %s2529_s16 }
 0x8f7   : > { %p2075_p13 = pnand %p2074_p12, %p2643_p7 }
 0x8f8   : > { %p2080_p5 = por %p2079_p4, %p2078_p1 }
 0x8f9   : > { %p2076_p2 = pneg %p2075_p13 }
 0x8fa   : > { %p2082_p10 = por %p2081_p6, %p2080_p5 }
 0x8fc   : > { %p2083_p11 = pnand %p2082_p10, %p2076_p2 }
 0x8fe   : > { %2086 = shalt.err (!%p2083_p11)
}
 0x8ff   : > { %1736 = dma.vmem_to_hbm [thread:$0]  (%p2643_p7), %s1319_s17, 128, %s2529_s16, %s1300_s23   ;;  %v1596_v41 = vld [vmem:[%s2614_s6 + $0x7] ss:$0 sm:$0xff]  ;;  %v1597_v43 = vld [vmem:[%s2614_s6 + $0x8] ss:$0 sm:$0xff] }
 0x900   : > { %s372_s26 = scalar_lea.vmem [#allocation15], %s1481_s19  ;;  %s2565_s23 = scalar_lea.hbm %s2617_s9, %s1600_s11 }
 0x901   : > { %s1331_s13 = sshll.u32 %s372_s26, 4  ;;  %s1305_s12 = scalar_lea.sflag [#allocation16], %s2520_s30  ;;  %s2567_s13 = int_to_ptr.vmem [resolvable:$true] %s1331_s13 }
 0x902   : > { %s2087_s25 = scalar_lea.vmem %s2567_s13, 128  ;;  %s2185_s19 = smov [#allocation15]  }
 0x903   : > { %p2088_p0 = scmp.ne.s32.totalorder %s2567_s13, %s2087_s25  ;;  %s2091_s24 = sshll.u32 %s2185_s19, 4  ;;  %s2092_s24 = int_to_ptr.vmem [resolvable:$false] %s2091_s24 }
 0x904   : > { %s2093_s0 = scalar_lea.vmem %s2092_s24, 256  ;;  %p2094_p3 = scmp.lt.s32.totalorder %s2567_s13, %s2092_s24 }
 0x905   : > { %p2089_p8 = pnand %p2088_p0, %p2643_p7  ;;  %p2095_p12 = scmp.lt.s32.totalorder %s2093_s0, %s2087_s25 }
 0x907   : > { %p2090_p9 = pneg %p2089_p8  ;;  %p2096_p13 = por %p2095_p12, %p2094_p3 }
 0x909   : > { %p2097_p2 = pnand %p2096_p13, %p2090_p9 }
 0x97f   : > { %v1283_v34 = vpop.xlane.xlu1 %1282 }
 0x980   : > { %v1284_v38 = vmul.f32 0.0078125, %v1283_v34 }
 0x982   : > { %v1285_v39 = vadd.f32 1e-05, %v1284_v38 }
 0x984   : > { %1907 = vrsqrt.f32 %v1285_v39 }
 0x98e   : > { %v1908_v40 = vpop.eup %1907 }
 0x98f   : > { %v1287_v42 = vmul.f32 %v1908_v40, %v1280_v36 }
 0x991   : > { %v1292_v44 = vmul.f32 %v1596_v41, %v1287_v42 }
 0x993   : > { %v1297_v45 = vadd.f32 %v1597_v43, %v1292_v44 }
 0x995   : > { %1298 = vst [vmem:[%s372_s26] sm:$0xff] %v1297_v45 }
 0x996   : > { %2100 = shalt.err (!%p2097_p2)
}
 0x997   : > { %s2101_s30 = scalar_lea.hbm %s2565_s23, 128  ;;  %s2105_s14 = scalar_lea.hbm %s2617_s9, 256 }
 0x998   : > { %p2102_p1 = scmp.ne.s32.totalorder %s2565_s23, %s2101_s30  ;;  %p2106_p6 = scmp.lt.u32.totalorder %s2565_s23, %s2617_s9 }
 0x999   : > { %p2107_p10 = scmp.lt.u32.totalorder %s2105_s14, %s2101_s30  ;;  %p2109_p0 = scmp.lt.u32.totalorder %s2101_s30, %s2565_s23 }
 0x99a   : > { %p2103_p4 = pnand %p2102_p1, %p2643_p7 }
 0x99b   : > { %p2108_p11 = por %p2107_p10, %p2106_p6 }
 0x99c   : > { %p2104_p5 = pneg %p2103_p4 }
 0x99d   : > { %p2110_p8 = por %p2109_p0, %p2108_p11 }
 0x99f   : > { %p2111_p9 = pnand %p2110_p8, %p2104_p5 }
 0x9a1   : > { %2114 = shalt.err (!%p2111_p9)
}
 0x9a2   : > { %1737 = dma.vmem_to_hbm [thread:$0]  (%p2643_p7), %s2567_s13, 128, %s2565_s23, %s1305_s12  }
 0x9a3 PF: > { %s2644_s18 = sld [smem:[#allocation23_spill]]  ;;  %s2645_s10 = sld [smem:[#allocation27_spill]] }
 0x9a4   : > { %p1773_p3 = scmp.ge.s32.totalorder %s2167_s22, 2 }
 0x9a9   : > { %s1343_s21 = sand.u32 1, %s2644_s18   ;;  %p2646_p12 = scmp.ne.s32.totalorder %s2645_s10, 0 }
 0x9aa   : > { %s1344_s26 = scalar_lea.sflag [#allocation7], %s1343_s21 }
 0x9ab   : > { %p1757_p13 = pnand %p1773_p3, %p2646_p12 }
 0x9ad   : > { %2146 = dma.done.wait (!%p1757_p13), %s1344_s26, 128  }
 0x9ae   : > { %2148 = vsyncadd (!%p1757_p13), %s1344_s26, 4294967168  ;;  %s1353_s16 = scalar_lea.sflag [#allocation16], %s1343_s21 }
 0x9af   : > { %2150 = dma.done.wait (!%p1757_p13), %s1353_s16, 128  }
 0x9b0   : > { %2152 = vsyncadd (!%p1757_p13), %s1353_s16, 4294967168  ;;  %s2647_s22 = sld [smem:[#allocation25_spill]]  ;;  %s2648_s28 = sld [smem:[#allocation24_spill]] }
 0x9b1   : > { %s2649_s21 = sld [smem:[#allocation26_spill]]  ;;  %s2650_s19 = smov %s2159_s20 }
 0x9b6   : > { %p30_p7 = scmp.ge.s32.totalorder %s2647_s22, 4   ;;  %s2651_s20 = smov %s2648_s28 }
 0x9b8   :  { %32 = sbr.rel (!%p30_p7) target bundleno = 20 (0x14), region = 126 }
 0x9bf   :  { %1358 = vsyncpa [#allocation6], 1 }
 0x9c0   :  { %1360 = vsyncpa [#allocation6 + $0x1], 1 }
 0x9c1   :  { %1361 = vsyncpa [#allocation9], 1 }
 0x9c2   :  { %1362 = vsyncpa [#allocation12], 1 }
 0x9c3   :  { %1363 = vsyncpa [#allocation7], 1 }
 0x9c4   :  { %1365 = vsyncpa [#allocation7 + $0x1], 1 }
 0x9c5   :  { %1366 = vsyncpa [#allocation16], 1 }
 0x9c6   :  { %1368 = vsyncpa [#allocation16 + $0x1], 1 }

</bundles_post_ra>
